<compile_context>
chip_gen: v6e
topology: v6e:2x2x1
jax: 0.10.0
libtpu: 0.0.40
codegen_flags: <defaults>
</compile_context>

<pallas_src>
import functools

import jax
import jax.numpy as jnp
from jax.experimental import pallas as pl
from jax.experimental.pallas import tpu as pltpu

_EPS = 1e-5  # PyTorch BatchNorm1d default eps


# ----------------------------------------------------------------------------- sizing
@functools.lru_cache(maxsize=None)
def _vmem_limit_bytes():
    # 3/4 of physical VMEM (v5e/v6e: 128 MiB, v7x: 64 MiB); safe fallback 64 MiB.
    try:
        cap = int(pltpu.get_tpu_info().vmem_capacity_bytes)
        return max(32 << 20, (cap * 3) // 4)
    except Exception:
        return 64 << 20


def _cparams(semantics=None):
    if semantics is None:
        return pltpu.CompilerParams(vmem_limit_bytes=_vmem_limit_bytes())
    return pltpu.CompilerParams(dimension_semantics=semantics,
                                vmem_limit_bytes=_vmem_limit_bytes())


def _choose_row_tile(n):
    # adjacency row tile: bigger where VMEM is bigger (v5e/v6e) than on v7x
    cap = 1024 if _vmem_limit_bytes() >= (80 << 20) else 512
    if n <= cap:
        return n
    t = (cap // 8) * 8
    while t >= 8:
        if n % t == 0:
            return t
        t -= 8
    return n


def _choose_hw_tile(hw, rows):
    # tile the pixel axis so ~rows x T x (few bytes) stays well under a few MiB
    if hw % 128 != 0:
        return hw
    budget = 4 << 20
    t_max = max(128, (budget // max(1, rows * 8)) // 128 * 128)
    if hw <= t_max:
        return hw
    t = t_max
    while t >= 128:
        if hw % t == 0:
            return t
        t -= 128
    return hw


# ----------------------------------------------------------------------------- helpers
def _vmem_call(kernel, out_shapes, *args):
    """Run a kernel with every operand / result as a single full-array VMEM block."""
    multi = isinstance(out_shapes, (tuple, list))
    outs = tuple(out_shapes) if multi else out_shapes
    vm = pl.BlockSpec(memory_space=pltpu.MemorySpace.VMEM)
    return pl.pallas_call(
        kernel,
        out_shape=outs,
        in_specs=[vm for _ in args],
        out_specs=(tuple(vm for _ in outs) if multi else vm),
        compiler_params=_cparams(),
    )(*args)


def _bn_relu(y, gamma, beta):
    # training-mode BatchNorm1d (batch stats, biased variance) + ReLU, all in f32
    mu = jnp.mean(y, axis=0, keepdims=True)
    var = jnp.mean((y - mu) ** 2, axis=0, keepdims=True)
    return jnp.maximum((y - mu) * jax.lax.rsqrt(var + _EPS) * gamma + beta, 0.0)


def _mm(a, w_ref):
    return jnp.dot(a, w_ref[...], preferred_element_type=jnp.float32)


# ----------------------------------------------------------------------------- kernels
def _pool_op_kernel(lab_ref, pool_ref, cnt_ref):
    # lab_ref:  (1, 1, T) int32 superpixel id per pixel (row-major tile of HW)
    # pool_ref: (1, K, T) bf16 RAW 0/1 membership (normalization deferred)
    # cnt_ref:  (1, K, 1) f32 per-superpixel pixel counts (accumulated over T tiles)
    K, T = pool_ref.shape[1], pool_ref.shape[2]
    lab = lab_ref[0]                                                  # (1, T)
    ids = jax.lax.broadcasted_iota(jnp.int32, (K, T), 0)
    onehot = (ids == lab).astype(jnp.float32)
    pool_ref[0] = onehot.astype(jnp.bfloat16)

    @pl.when(pl.program_id(1) == 0)
    def _():
        cnt_ref[...] = jnp.zeros_like(cnt_ref)

    cnt_ref[0] += jnp.sum(onehot, axis=1, keepdims=True)


def _make_sp_pool_kernel(num_feats):
    def kernel(p_ref, cnt_ref, *rest):
        # p_ref: (1,K,T) bf16 raw membership; cnt_ref: (1,K,1) f32 counts
        # rest:  num_feats inputs (1,C_i,T) f32 (native layout) + num_feats outputs (1,K,C_i)
        f_refs = rest[:num_feats]
        o_refs = rest[num_feats:]
        t = pl.program_id(1)

        @pl.when(t == 0)
        def _():
            for o_ref in o_refs:
                o_ref[...] = jnp.zeros_like(o_ref)

        p = p_ref[0]                                                  # (K, T) bf16
        for f_ref, o_ref in zip(f_refs, o_refs):
            f = f_ref[0].astype(jnp.bfloat16)                         # (C, T)
            o_ref[0] += jax.lax.dot_general(
                p, f, (((1,), (1,)), ((), ())),
                preferred_element_type=jnp.float32)                   # (K, C)

        @pl.when(t == pl.num_programs(1) - 1)
        def _():
            inv = 1.0 / jnp.maximum(cnt_ref[0], 1.0)                  # exact reciprocal
            for o_ref in o_refs:
                o_ref[0] *= inv
    return kernel


def _prep0_kernel(x4_ref, skip_ref, gpre_ref, bpre_ref, wa_ref, wb_ref, br_ref,
                  h_ref, r_ref):
    # Fused: bn_pre + ReLU on [coords|fx|fy]; the (no-bias) left linears and the root
    # linears of SignedConv(first_aggr=True) applied in ONE concatenated matmul per LHS
    # (weights packed as [wpl | wnl | wpr | wnr] and row-split 4 / skip-channels).
    xa = _bn_relu(x4_ref[...], gpre_ref[...], bpre_ref[...]).astype(jnp.bfloat16)
    xb = skip_ref[...].astype(jnp.bfloat16)
    y = _mm(xa, wa_ref) + _mm(xb, wb_ref)                             # (n, 4*O)
    o2 = h_ref.shape[1]                                               # 2*O
    h_ref[...] = y[:, :o2].astype(jnp.bfloat16)                       # [hp | hn]
    r_ref[...] = y[:, o2:] + br_ref[...]                              # [rp | rn]


def _agg0_kernel(ap_ref, an_ref, h_ref, r_ref, y_ref):
    # Gridded over adjacency row tiles.  first_aggr=True aggregation:
    # ypos = A_pos @ hp + rp ; yneg = A_neg @ hn + rn ; output = [ypos | yneg] pre-BN.
    tp = jnp.dot(ap_ref[...], h_ref[...], preferred_element_type=jnp.float32)
    tn = jnp.dot(an_ref[...], h_ref[...], preferred_element_type=jnp.float32)
    o = y_ref.shape[1] // 2
    col = jax.lax.broadcasted_iota(jnp.int32, y_ref.shape, 1)
    y_ref[...] = jnp.where(col < o, tp, tn) + r_ref[...]


def _merger_kernel(yprev_ref, skip_ref, gprev_ref, bprev_ref,
                   wmx_ref, wms_ref, bm_ref, gm_ref, bem_ref, xcat_ref):
    # Fused: previous layer's BatchNorm1d(2*O)+ReLU (global batch stats) + pos/neg
    # mergers (Linear + BN + ReLU).  All concats removed via block-packed weights;
    # output is one lane-dense (n, 2*F) bf16 slab [mpos | mneg].
    xprev = _bn_relu(yprev_ref[...], gprev_ref[...], bprev_ref[...]).astype(jnp.bfloat16)
    skip16 = skip_ref[...].astype(jnp.bfloat16)
    m = _mm(xprev, wmx_ref) + _mm(skip16, wms_ref) + bm_ref[...]
    xcat_ref[...] = _bn_relu(m, gm_ref[...], bem_ref[...]).astype(jnp.bfloat16)


def _aggi_kernel(ap_ref, an_ref, xfull_ref, xtile_ref,
                 wp_ref, wn_ref, wr_ref, b_ref, y_ref):
    # Gridded over adjacency row tiles.  SignedConv(first_aggr=False):
    # the four adjacency matmuls are fused into TWO wide ones (A @ [xp|xn]); the
    # left/right linears use block-(anti)diagonal packed weights -> 3 small dots.
    aggp = jnp.dot(ap_ref[...], xfull_ref[...],
                   preferred_element_type=jnp.float32).astype(jnp.bfloat16)  # [App|Apn]
    aggn = jnp.dot(an_ref[...], xfull_ref[...],
                   preferred_element_type=jnp.float32).astype(jnp.bfloat16)  # [Anp|Ann]
    y_ref[...] = (_mm(aggp, wp_ref) + _mm(aggn, wn_ref)
                  + _mm(xtile_ref[...], wr_ref) + b_ref[...])


def _final_kernel(y_ref, g_ref, b_ref, w_ref, bpw_ref, out_ref):
    # Fused: last layer BatchNorm1d(2*O)+ReLU + lin_pw + ReLU.
    x = _bn_relu(y_ref[...], g_ref[...], b_ref[...]).astype(jnp.bfloat16)
    out_ref[...] = jnp.maximum(_mm(x, w_ref) + bpw_ref[...], 0.0)


# ----------------------------------------------------------------------------- glue
def _interp_matrix(out_size, in_size):
    # nn.UpsamplingBilinear2d == bilinear with align_corners=True
    if in_size == 1:
        return jnp.ones((out_size, 1), jnp.float32)
    if out_size == 1:
        return jnp.zeros((1, in_size), jnp.float32).at[0, 0].set(1.0)
    pos = jnp.arange(out_size, dtype=jnp.float32) * (in_size - 1) / (out_size - 1)
    lo = jnp.minimum(jnp.floor(pos).astype(jnp.int32), in_size - 2)
    hi = lo + 1
    whi = pos - lo.astype(jnp.float32)
    rows = jnp.arange(out_size)
    m = jnp.zeros((out_size, in_size), jnp.float32)
    m = m.at[rows, lo].add(1.0 - whi)
    m = m.at[rows, hi].add(whi)
    return m


def compute_pool_operator(labels, n_sp):
    """Raw (unnormalized) membership (B,K,HW) bf16 and counts (B,K,1) f32."""
    B, _, H, W = labels.shape
    HW = H * W
    lab = labels.reshape(B, 1, HW).astype(jnp.int32)
    t_hw = _choose_hw_tile(HW, n_sp + 2)
    n_t = HW // t_hw
    pool, counts = pl.pallas_call(
        _pool_op_kernel,
        out_shape=(jax.ShapeDtypeStruct((B, n_sp, HW), jnp.bfloat16),
                   jax.ShapeDtypeStruct((B, n_sp, 1), jnp.float32)),
        grid=(B, n_t),
        in_specs=[pl.BlockSpec((1, 1, t_hw), lambda b, t: (b, 0, t))],
        out_specs=(pl.BlockSpec((1, n_sp, t_hw), lambda b, t: (b, 0, t)),
                   pl.BlockSpec((1, n_sp, 1), lambda b, t: (b, 0, 0))),
        compiler_params=_cparams(("parallel", "arbitrary")),
    )(lab)
    return pool, counts


def pool_all(pool_raw, counts, H, W, feature_maps):
    """sp_pool every (B, C_i, h_i, w_i) map; maps sharing a resolution go through one
    pallas_call (separate inputs / outputs, no transpose, no channel concat); the raw
    pooling operator is reused across all of them and normalization happens on the
    pooled (K,C) result."""
    B, K, HW = pool_raw.shape
    pool_4d = pool_raw.reshape(B, K, H, W)
    groups = {}
    for idx, fm in enumerate(feature_maps):
        groups.setdefault((int(fm.shape[2]), int(fm.shape[3])), []).append(idx)
    results = [None] * len(feature_maps)
    for (h, w), idxs in groups.items():
        hw = h * w
        if (h, w) == (H, W):
            p_src = pool_raw
        else:
            up_h = _interp_matrix(H, h)
            up_w = _interp_matrix(W, w)
            # separable fold: P_src[k,p,q] = sum_{y,x} P[k,y,x] Uh[y,p] Uw[x,q]
            p_src = jnp.einsum('bkyx,yp,xq->bkpq', pool_4d.astype(jnp.float32),
                               up_h, up_w).reshape(B, K, hw).astype(jnp.bfloat16)
        feats = [feature_maps[i].reshape(B, feature_maps[i].shape[1], hw) for i in idxs]
        c_total = sum(int(f.shape[1]) for f in feats)
        t_hw = _choose_hw_tile(hw, K + c_total)
        n_t = hw // t_hw
        kernel = _make_sp_pool_kernel(len(feats))
        out_shapes = tuple(jax.ShapeDtypeStruct((B, K, int(f.shape[1])), jnp.float32)
                           for f in feats)
        in_specs = ([pl.BlockSpec((1, K, t_hw), lambda b, t: (b, 0, t)),
                     pl.BlockSpec((1, K, 1), lambda b, t: (b, 0, 0))]
                    + [pl.BlockSpec((1, int(f.shape[1]), t_hw), lambda b, t: (b, 0, t))
                       for f in feats])
        out_specs = tuple(pl.BlockSpec((1, K, int(f.shape[1])), lambda b, t: (b, 0, 0))
                          for f in feats)
        pooled = pl.pallas_call(
            kernel,
            out_shape=out_shapes,
            grid=(B, n_t),
            in_specs=in_specs,
            out_specs=out_specs,
            compiler_params=_cparams(("parallel", "arbitrary")),
        )(p_src, counts, *feats)
        if not isinstance(pooled, (tuple, list)):
            pooled = (pooled,)
        for i, pr in zip(idxs, pooled):
            results[i] = pr.reshape(B * K, -1)
    return results


def make_coord_map(batch_size, w, h):
    # matches LocMotionAppearance.make_coord_map (requires w == h, as in the torch code)
    xx = jnp.broadcast_to((jnp.arange(w, dtype=jnp.float32) / (w - 1))[:, None], (w, w))
    yy = jnp.broadcast_to((jnp.arange(h, dtype=jnp.float32) / (h - 1))[None, :], (h, h))
    out = jnp.stack([xx, yy], axis=0)[None]
    return jnp.broadcast_to(out, (batch_size, 2, w, h))


def build_signed_adjs(edges_nn, n):
    # PyG mean aggregation: out[i] = mean_{(j->i) in E} x[j]; isolated nodes -> 0.
    src, dst, sign = edges_nn[0], edges_nn[1], edges_nn[2]
    pos_w = (sign != -1).astype(jnp.float32)
    neg_w = (sign == -1).astype(jnp.float32)
    a_pos = jnp.zeros((n, n), jnp.float32).at[dst, src].add(pos_w)
    a_neg = jnp.zeros((n, n), jnp.float32).at[dst, src].add(neg_w)
    a_pos = a_pos / jnp.maximum(jnp.sum(a_pos, axis=1, keepdims=True), 1.0)
    a_neg = a_neg / jnp.maximum(jnp.sum(a_neg, axis=1, keepdims=True), 1.0)
    return a_pos.astype(jnp.bfloat16), a_neg.astype(jnp.bfloat16)


# ----------------------------------------------------------------------------- params
def _init_linear(key, fan_in, fan_out, bias=True):
    kw, kb = jax.random.split(key)
    w = 0.1 * jax.random.normal(kw, (fan_in, fan_out), jnp.float32)
    b = 0.1 * jax.random.normal(kb, (1, fan_out), jnp.float32) if bias else None
    return w, b


def _init_bn(key, n):
    kg, kb = jax.random.split(key)
    gamma = 1.0 + 0.1 * jax.random.normal(kg, (1, n), jnp.float32)
    beta = 0.1 * jax.random.normal(kb, (1, n), jnp.float32)
    return gamma, beta


def init_locmotionapp_params(key, in_dims):
    in_dims = list(in_dims)
    in_dims[0] = 36                       # as in LocMotionAppearance.__init__
    keys = iter(jax.random.split(key, 64))
    bf = lambda a: a.astype(jnp.bfloat16)     # MXU operands in bf16; biases/BN in f32
    params = {'bn_pre': _init_bn(next(keys), 4)}
    blocks, mergers = [], []
    for i in range(len(in_dims) - 1):
        f, o = in_dims[i], in_dims[i + 1]
        blk = {}
        if i == 0:                        # SignedConv(first_aggr=True); input = [4ch | skip0]
            wpl, _ = _init_linear(next(keys), f, o, bias=False)
            wpr, bpr = _init_linear(next(keys), f, o)
            wnl, _ = _init_linear(next(keys), f, o, bias=False)
            wnr, bnr = _init_linear(next(keys), f, o)
            w_all = jnp.concatenate([wpl, wnl, wpr, wnr], axis=1)     # (f, 4*o)
            blk['w_a'] = bf(w_all[:4])                                # rows for bn_pre(x)
            blk['w_b'] = bf(w_all[4:])                                # rows for skip0
            blk['b'] = jnp.concatenate([bpr, bnr], axis=1)            # (1, 2*o)
        else:                             # SignedConv(first_aggr=False)
            wpl, _ = _init_linear(next(keys), 2 * f, o, bias=False)
            wnl, _ = _init_linear(next(keys), 2 * f, o, bias=False)
            wpr, bpr = _init_linear(next(keys), f, o)
            wnr, bnr = _init_linear(next(keys), f, o)
            z = jnp.zeros((f, o), jnp.float32)
            # block-packed so the kernel needs only 3 dots with a [xp|xn]-ordered LHS:
            blk['w_p'] = bf(jnp.block([[wpl[:f], z], [z, wnl[:f]]]))   # acts on A_pos@[xp|xn]
            blk['w_n'] = bf(jnp.block([[z, wnl[f:]], [wpl[f:], z]]))   # acts on A_neg@[xp|xn]
            blk['w_r'] = bf(jnp.block([[wpr, z], [z, wnr]]))           # acts on [xp|xn]
            blk['b'] = jnp.concatenate([bpr, bnr], axis=1)             # (1, 2*o)
        blk['bn'] = _init_bn(next(keys), 2 * o)                        # BatchNorm1d(2*out)
        blocks.append(blk)
        if i > 0:
            wp, bp = _init_linear(next(keys), 2 * f, f)               # merger_pos
            gp_, bep = _init_bn(next(keys), f)
            wn, bn_ = _init_linear(next(keys), 2 * f, f)              # merger_neg
            gn_, ben = _init_bn(next(keys), f)
            z = jnp.zeros((f, f), jnp.float32)
            mergers.append({
                # prev layer output is [outp | outn]; torch's x_pos = outn, x_neg = outp
                'w_x': bf(jnp.block([[z, wn[:f]], [wp[:f], z]])),     # (2f, 2f)
                'w_s': bf(jnp.concatenate([wp[f:], wn[f:]], axis=1)), # (f, 2f)
                'b': jnp.concatenate([bp, bn_], axis=1),
                'g': jnp.concatenate([gp_, gn_], axis=1),
                'be': jnp.concatenate([bep, ben], axis=1),
            })
    params['blocks'] = blocks
    params['mergers'] = mergers
    # TODO(synk): original hard-codes nn.Linear(512, 256); scaled to 2*in_dims[-1] -> in_dims[-1].
    w_pw, b_pw = _init_linear(next(keys), 2 * in_dims[-1], in_dims[-1])
    params['lin_pw'] = {'w': bf(w_pw), 'b': b_pw}
    return params


# ----------------------------------------------------------------------------- forward
def _locmotionapp_forward_impl(params, data, autoenc_skips, edges_nn, n_sp):
    labels = data['labels']
    batch_size = labels.shape[0]
    H, W = int(labels.shape[2]), int(labels.shape[3])
    n = batch_size * n_sp

    coord_maps = make_coord_map(batch_size, H, W)
    base_maps = jnp.concatenate([coord_maps, data['fx'], data['fy']], axis=1)  # (B,4,H,W)

    # per-frame raw pooling operator + counts, reused across coords/fx/fy and every skip
    pool_raw, counts = compute_pool_operator(labels, n_sp)
    pooled = pool_all(pool_raw, counts, H, W, [base_maps] + list(autoenc_skips))
    x_base = pooled[0]                                                         # (n, 4)
    pooled_skips = pooled[1:]

    a_pos, a_neg = build_signed_adjs(edges_nn, n)
    tm = _choose_row_tile(n)
    n_tiles = n // tm

    # ---- block 0: bn_pre + concat(skip0) + SignedConv(first_aggr=True) ----
    blk0 = params['blocks'][0]
    o0 = blk0['b'].shape[1] // 2
    h_cat, r_cat = _vmem_call(
        _prep0_kernel,
        (jax.ShapeDtypeStruct((n, 2 * o0), jnp.bfloat16),
         jax.ShapeDtypeStruct((n, 2 * o0), jnp.float32)),
        x_base, pooled_skips[0], params['bn_pre'][0], params['bn_pre'][1],
        blk0['w_a'], blk0['w_b'], blk0['b'])

    y = pl.pallas_call(
        _agg0_kernel,
        out_shape=jax.ShapeDtypeStruct((n, 2 * o0), jnp.float32),
        grid=(n_tiles,),
        in_specs=[pl.BlockSpec((tm, n), lambda i: (i, 0)),            # A_pos row tile
                  pl.BlockSpec((tm, n), lambda i: (i, 0)),            # A_neg row tile
                  pl.BlockSpec((n, 2 * o0), lambda i: (0, 0)),        # [hp|hn] full
                  pl.BlockSpec((tm, 2 * o0), lambda i: (i, 0))],      # [rp|rn] tile
        out_specs=pl.BlockSpec((tm, 2 * o0), lambda i: (i, 0)),
        compiler_params=_cparams(("parallel",)),
    )(a_pos, a_neg, h_cat, r_cat)                                     # pre-BN (n, 2*o0)

    # ---- blocks i > 0: (prev BN+ReLU + mergers) then gridded aggregation ----
    for i in range(1, len(params['blocks'])):
        blk = params['blocks'][i]
        mrg = params['mergers'][i - 1]
        f = blk['w_r'].shape[0] // 2
        o = blk['w_r'].shape[1] // 2
        g_prev, b_prev = params['blocks'][i - 1]['bn']

        x_cat = _vmem_call(
            _merger_kernel,
            jax.ShapeDtypeStruct((n, 2 * f), jnp.bfloat16),
            y, pooled_skips[i], g_prev, b_prev,
            mrg['w_x'], mrg['w_s'], mrg['b'], mrg['g'], mrg['be'])

        y = pl.pallas_call(
            _aggi_kernel,
            out_shape=jax.ShapeDtypeStruct((n, 2 * o), jnp.float32),
            grid=(n_tiles,),
            in_specs=[pl.BlockSpec((tm, n), lambda i_: (i_, 0)),      # A_pos row tile
                      pl.BlockSpec((tm, n), lambda i_: (i_, 0)),      # A_neg row tile
                      pl.BlockSpec((n, 2 * f), lambda i_: (0, 0)),    # [xp|xn] full (RHS)
                      pl.BlockSpec((tm, 2 * f), lambda i_: (i_, 0)),  # [xp|xn] row tile
                      pl.BlockSpec((2 * f, 2 * o), lambda i_: (0, 0)),
                      pl.BlockSpec((2 * f, 2 * o), lambda i_: (0, 0)),
                      pl.BlockSpec((2 * f, 2 * o), lambda i_: (0, 0)),
                      pl.BlockSpec((1, 2 * o), lambda i_: (0, 0))],
            out_specs=pl.BlockSpec((tm, 2 * o), lambda i_: (i_, 0)),
            compiler_params=_cparams(("parallel",)),
        )(a_pos, a_neg, x_cat, x_cat, blk['w_p'], blk['w_n'], blk['w_r'], blk['b'])

    # ---- final: last-layer BN + ReLU + lin_pw + ReLU, fused ----
    g_last, b_last = params['blocks'][-1]['bn']
    pw = params['lin_pw']
    x = _vmem_call(_final_kernel,
                   jax.ShapeDtypeStruct((n, pw['w'].shape[1]), jnp.float32),
                   y, g_last, b_last, pw['w'], pw['b'])
    return {'siam_feats': x}


locmotionapp_forward = jax.jit(_locmotionapp_forward_impl, static_argnames=('n_sp',))


def siamese_forward(params, data, autoenc_skips, edges_nn=None, n_sp=None):
    # TODO(synk): self.dec(...) (DEC / DRN autoencoder) not reimplemented -- skips given as input.
    res = {}
    if edges_nn is not None:
        res.update(locmotionapp_forward(params, data, autoenc_skips, edges_nn, n_sp=n_sp))
    # TODO(synk): res['rho_hat'] / res['rho_hat_pooled'] require rho_dec (ConvolutionalDecoder),
    #             whose definition is not provided.
    return res


# ----------------------------------------------------------------------------- main
if __name__ == "__main__":
    key = jax.random.PRNGKey(0)
    k_par, k_fx, k_fy, k_s0, k_s1, k_e = jax.random.split(key, 6)

    B, H, W = 2, 16, 16
    K = 8                      # superpixels per frame (static; precomputed outside hot path)
    # superpixel label maps: frame 0 -> 2x4 block grid, frame 1 -> 4x2
    r = jnp.arange(H)[:, None]
    c = jnp.arange(W)[None, :]
    lab0 = (r // 8) * 4 + (c // 4)
    lab1 = (r // 4) * 2 + (c // 8)
    labels = jnp.stack([lab0, lab1], axis=0)[:, None].astype(jnp.int32)    # (2, 1, 16, 16)

    data = {
        'labels': labels,
        'fx': 0.5 * jax.random.normal(k_fx, (B, 1, H, W), jnp.float32),
        'fy': 0.5 * jax.random.normal(k_fy, (B, 1, H, W), jnp.float32),
    }

    in_dims = [4, 16, 32]        # in_dims[0] is overwritten to 36 inside the module
    autoenc_skips = [
        0.5 * jax.random.normal(k_s0, (B, 32, 8, 8), jnp.float32),          # 4 + 32 = 36
        0.5 * jax.random.normal(k_s1, (B, in_dims[1], 8, 8), jnp.float32),
    ]

    n_nodes = B * K
    E = 40
    ke1, ke2 = jax.random.split(k_e)
    src = jax.random.randint(ke1, (E,), 0, n_nodes)
    dst = jax.random.randint(ke2, (E,), 0, n_nodes)
    sign = jnp.where(jnp.arange(E) % 3 == 0, -1, 1)
    edges_nn = jnp.stack([src, dst, sign], axis=0).astype(jnp.int32)        # (3, E)

    params = init_locmotionapp_params(k_par, in_dims)
    res = siamese_forward(params, data, autoenc_skips, edges_nn, n_sp=K)
    feats = jax.block_until_ready(res['siam_feats'])
    assert feats.shape == (n_nodes, in_dims[-1])
    assert bool(jnp.all(jnp.isfinite(feats)))
    print("KERNEL_OK")
</pallas_src>

<mosaic_0001>
module attributes {stable_mosaic.version = 11 : i64} {
  func.func private @main(%arg0: i32) attributes {dimension_semantics = [#tpu.dimension_semantics<core_parallel>], iteration_bounds = array<i64: 2>, tpu.core_type = #tpu.core_type<sc_scalar_subcore>, window_params = []} {
    return
  }
}

module attributes {stable_mosaic.version = 11 : i64} {
  func.func private @main(%arg0: i32) attributes {dimension_semantics = [#tpu.dimension_semantics<core_parallel>], iteration_bounds = array<i64: 2>, tpu.core_type = #tpu.core_type<sc_scalar_subcore>, window_params = []} {
    return
  }
}

module attributes {stable_mosaic.version = 11 : i64} {
  func.func @_pool_op_kernel(%arg0: i32, %arg1: i32, %arg2: memref<1x1x256xi32, #tpu.memory_space<vmem>>, %arg3: memref<1x8x256xbf16, #tpu.memory_space<vmem>>, %arg4: memref<1x8x1xf32, #tpu.memory_space<vmem>>) attributes {dimension_semantics = [#tpu.dimension_semantics<parallel>, #tpu.dimension_semantics<arbitrary>], iteration_bounds = array<i64: 2, 1>, scalar_prefetch = 0 : i64, scratch_operands = 0 : i64, tpu.core_type = #tpu.core_type<tc>, window_params = [{transform_indices = @transform_0, window_bounds = array<i64: 1, 1, 256>}, {transform_indices = @transform_1, window_bounds = array<i64: 1, 8, 256>}, {transform_indices = @transform_2, window_bounds = array<i64: 1, 8, 1>}]} {
    %c0 = arith.constant 0 : index
    %c0_0 = arith.constant 0 : index
    %c0_1 = arith.constant 0 : index
    %0 = vector.load %arg2[%c0, %c0_0, %c0_1] : memref<1x1x256xi32, #tpu.memory_space<vmem>>, vector<1x1x256xi32>
    %1 = vector.shape_cast %0 : vector<1x1x256xi32> to vector<1x256xi32>
    %2 = tpu.iota {dimensions = array<i32: 0>} : vector<8x256xi32>
    %3 = vector.broadcast %1 : vector<1x256xi32> to vector<8x256xi32>
    %4 = arith.cmpi eq, %2, %3 : vector<8x256xi32>
    %5 = arith.extui %4 : vector<8x256xi1> to vector<8x256xi32>
    %6 = arith.sitofp %5 : vector<8x256xi32> to vector<8x256xf32>
    %7 = arith.truncf %6 : vector<8x256xf32> to vector<8x256xbf16>
    %c0_2 = arith.constant 0 : index
    %c0_3 = arith.constant 0 : index
    %c0_4 = arith.constant 0 : index
    %8 = vector.load %arg3[%c0_2, %c0_3, %c0_4] : memref<1x8x256xbf16, #tpu.memory_space<vmem>>, vector<1x8x256xbf16>
    %9 = vector.shape_cast %8 : vector<1x8x256xbf16> to vector<8x256xbf16>
    %10 = vector.shape_cast %7 : vector<8x256xbf16> to vector<1x8x256xbf16>
    tpu.vector_store %arg3[%c0_2, %c0_3, %c0_4], %10 {strides = array<i32>} : memref<1x8x256xbf16, #tpu.memory_space<vmem>>, vector<1x8x256xbf16>,
    %c0_i32 = arith.constant 0 : i32
    %11 = arith.cmpi eq, %arg1, %c0_i32 : i32
    %12 = arith.extui %11 : i1 to i32
    %c0_i32_5 = arith.constant 0 : i32
    %13 = arith.cmpi ne, %12, %c0_i32_5 : i32
    scf.if %13 {
      %cst_12 = arith.constant 0.000000e+00 : f32
      %22 = vector.broadcast %cst_12 : f32 to vector<1x8x1xf32>
      %c0_13 = arith.constant 0 : index
      %c0_14 = arith.constant 0 : index
      %c0_15 = arith.constant 0 : index
      %23 = vector.load %arg4[%c0_13, %c0_14, %c0_15] : memref<1x8x1xf32, #tpu.memory_space<vmem>>, vector<1x8x1xf32>
      tpu.vector_store %arg4[%c0_13, %c0_14, %c0_15], %22 {strides = array<i32>} : memref<1x8x1xf32, #tpu.memory_space<vmem>>, vector<1x8x1xf32>,
    } else {
    }
    %c0_6 = arith.constant 0 : index
    %c0_7 = arith.constant 0 : index
    %c0_8 = arith.constant 0 : index
    %14 = vector.load %arg4[%c0_6, %c0_7, %c0_8] : memref<1x8x1xf32, #tpu.memory_space<vmem>>, vector<1x8x1xf32>
    %15 = vector.shape_cast %14 : vector<1x8x1xf32> to vector<8x1xf32>
    %cst = arith.constant dense<0.000000e+00> : vector<8xf32>
    %16 = vector.multi_reduction <add>, %6, %cst [1] : vector<8x256xf32> to vector<8xf32>
    %17 = vector.shape_cast %16 : vector<8xf32> to vector<8x1xf32>
    %18 = arith.addf %15, %17 : vector<8x1xf32>
    %c0_9 = arith.constant 0 : index
    %c0_10 = arith.constant 0 : index
    %c0_11 = arith.constant 0 : index
    %19 = vector.load %arg4[%c0_9, %c0_10, %c0_11] : memref<1x8x1xf32, #tpu.memory_space<vmem>>, vector<1x8x1xf32>
    %20 = vector.shape_cast %19 : vector<1x8x1xf32> to vector<8x1xf32>
    %21 = vector.shape_cast %18 : vector<8x1xf32> to vector<1x8x1xf32>
    tpu.vector_store %arg4[%c0_9, %c0_10, %c0_11], %21 {strides = array<i32>} : memref<1x8x1xf32, #tpu.memory_space<vmem>>, vector<1x8x1xf32>,
    return
  }
  func.func @transform_0(%arg0: i32, %arg1: i32) -> (i32, i32, i32) {
    %c0_i32 = arith.constant 0 : i32
    %c0_i32_0 = arith.constant 0 : i32
    return %arg0, %c0_i32, %arg1 : i32, i32, i32
  }
  func.func @transform_1(%arg0: i32, %arg1: i32) -> (i32, i32, i32) {
    %c0_i32 = arith.constant 0 : i32
    %c0_i32_0 = arith.constant 0 : i32
    return %arg0, %c0_i32, %arg1 : i32, i32, i32
  }
  func.func @transform_2(%arg0: i32, %arg1: i32) -> (i32, i32, i32) {
    %c0_i32 = arith.constant 0 : i32
    %c0_i32_0 = arith.constant 0 : i32
    %c0_i32_1 = arith.constant 0 : i32
    return %arg0, %c0_i32, %c0_i32_0 : i32, i32, i32
  }
}

module attributes {stable_mosaic.version = 11 : i64} {
  func.func @kernel(%arg0: i32, %arg1: i32, %arg2: memref<1x8x256xbf16, #tpu.memory_space<vmem>>, %arg3: memref<1x8x1xf32, #tpu.memory_space<vmem>>, %arg4: memref<1x4x256xf32, #tpu.memory_space<vmem>>, %arg5: memref<1x8x4xf32, #tpu.memory_space<vmem>>) attributes {dimension_semantics = [#tpu.dimension_semantics<parallel>, #tpu.dimension_semantics<arbitrary>], iteration_bounds = array<i64: 2, 1>, scalar_prefetch = 0 : i64, scratch_operands = 0 : i64, tpu.core_type = #tpu.core_type<tc>, window_params = [{transform_indices = @transform_0, window_bounds = array<i64: 1, 8, 256>}, {transform_indices = @transform_1, window_bounds = array<i64: 1, 8, 1>}, {transform_indices = @transform_2, window_bounds = array<i64: 1, 4, 256>}, {transform_indices = @transform_3, window_bounds = array<i64: 1, 8, 4>}]} {
    %c0_i32 = arith.constant 0 : i32
    %0 = arith.cmpi eq, %arg1, %c0_i32 : i32
    %1 = arith.extui %0 : i1 to i32
    %c0_i32_0 = arith.constant 0 : i32
    %2 = arith.cmpi ne, %1, %c0_i32_0 : i32
    scf.if %2 {
      %cst_14 = arith.constant 0.000000e+00 : f32
      %18 = vector.broadcast %cst_14 : f32 to vector<1x8x4xf32>
      %c0_15 = arith.constant 0 : index
      %c0_16 = arith.constant 0 : index
      %c0_17 = arith.constant 0 : index
      %19 = vector.load %arg5[%c0_15, %c0_16, %c0_17] : memref<1x8x4xf32, #tpu.memory_space<vmem>>, vector<1x8x4xf32>
      tpu.vector_store %arg5[%c0_15, %c0_16, %c0_17], %18 {strides = array<i32>} : memref<1x8x4xf32, #tpu.memory_space<vmem>>, vector<1x8x4xf32>,
    } else {
    }
    %c0 = arith.constant 0 : index
    %c0_1 = arith.constant 0 : index
    %c0_2 = arith.constant 0 : index
    %3 = vector.load %arg2[%c0, %c0_1, %c0_2] : memref<1x8x256xbf16, #tpu.memory_space<vmem>>, vector<1x8x256xbf16>
    %4 = vector.shape_cast %3 : vector<1x8x256xbf16> to vector<8x256xbf16>
    %c0_3 = arith.constant 0 : index
    %c0_4 = arith.constant 0 : index
    %c0_5 = arith.constant 0 : index
    %5 = vector.load %arg4[%c0_3, %c0_4, %c0_5] : memref<1x4x256xf32, #tpu.memory_space<vmem>>, vector<1x4x256xf32>
    %6 = vector.shape_cast %5 : vector<1x4x256xf32> to vector<4x256xf32>
    %7 = arith.truncf %6 : vector<4x256xf32> to vector<4x256xbf16>
    %c0_6 = arith.constant 0 : index
    %c0_7 = arith.constant 0 : index
    %c0_8 = arith.constant 0 : index
    %8 = vector.load %arg5[%c0_6, %c0_7, %c0_8] : memref<1x8x4xf32, #tpu.memory_space<vmem>>, vector<1x8x4xf32>
    %9 = vector.shape_cast %8 : vector<1x8x4xf32> to vector<8x4xf32>
    %cst = arith.constant dense<0.000000e+00> : vector<8x4xf32>
    %10 = tpu.matmul %4, %7, %cst {dimension_numbers = #tpu.dot_dimension_numbers<[1], [1], [0], [0], [0, 0, 1, 0], [], []>} : vector<8x256xbf16>, vector<4x256xbf16>, vector<8x4xf32> -> vector<8x4xf32>
    %11 = arith.addf %9, %10 : vector<8x4xf32>
    %c0_9 = arith.constant 0 : index
    %c0_10 = arith.constant 0 : index
    %c0_11 = arith.constant 0 : index
    %12 = vector.load %arg5[%c0_9, %c0_10, %c0_11] : memref<1x8x4xf32, #tpu.memory_space<vmem>>, vector<1x8x4xf32>
    %13 = vector.shape_cast %12 : vector<1x8x4xf32> to vector<8x4xf32>
    %14 = vector.shape_cast %11 : vector<8x4xf32> to vector<1x8x4xf32>
    tpu.vector_store %arg5[%c0_9, %c0_10, %c0_11], %14 {strides = array<i32>} : memref<1x8x4xf32, #tpu.memory_space<vmem>>, vector<1x8x4xf32>,
    %c0_i32_12 = arith.constant 0 : i32
    %15 = arith.cmpi eq, %arg1, %c0_i32_12 : i32
    %16 = arith.extui %15 : i1 to i32
    %c0_i32_13 = arith.constant 0 : i32
    %17 = arith.cmpi ne, %16, %c0_i32_13 : i32
    scf.if %17 {
      %c0_14 = arith.constant 0 : index
      %c0_15 = arith.constant 0 : index
      %c0_16 = arith.constant 0 : index
      %18 = vector.load %arg3[%c0_14, %c0_15, %c0_16] : memref<1x8x1xf32, #tpu.memory_space<vmem>>, vector<1x8x1xf32>
      %19 = vector.shape_cast %18 : vector<1x8x1xf32> to vector<8x1xf32>
      %cst_17 = arith.constant 1.000000e+00 : f32
      %20 = vector.broadcast %cst_17 : f32 to vector<8x1xf32>
      %21 = arith.maximumf %19, %20 : vector<8x1xf32>
      %cst_18 = arith.constant 1.000000e+00 : f32
      %22 = vector.broadcast %cst_18 : f32 to vector<8x1xf32>
      %23 = arith.divf %22, %21 : vector<8x1xf32>
      %c0_19 = arith.constant 0 : index
      %c0_20 = arith.constant 0 : index
      %c0_21 = arith.constant 0 : index
      %24 = vector.load %arg5[%c0_19, %c0_20, %c0_21] : memref<1x8x4xf32, #tpu.memory_space<vmem>>, vector<1x8x4xf32>
      %25 = vector.shape_cast %24 : vector<1x8x4xf32> to vector<8x4xf32>
      %26 = vector.broadcast %23 : vector<8x1xf32> to vector<8x4xf32>
      %27 = arith.mulf %25, %26 : vector<8x4xf32>
      %c0_22 = arith.constant 0 : index
      %c0_23 = arith.constant 0 : index
      %c0_24 = arith.constant 0 : index
      %28 = vector.load %arg5[%c0_22, %c0_23, %c0_24] : memref<1x8x4xf32, #tpu.memory_space<vmem>>, vector<1x8x4xf32>
      %29 = vector.shape_cast %28 : vector<1x8x4xf32> to vector<8x4xf32>
      %30 = vector.shape_cast %27 : vector<8x4xf32> to vector<1x8x4xf32>
      tpu.vector_store %arg5[%c0_22, %c0_23, %c0_24], %30 {strides = array<i32>} : memref<1x8x4xf32, #tpu.memory_space<vmem>>, vector<1x8x4xf32>,
    } else {
    }
    return
  }
  func.func @transform_0(%arg0: i32, %arg1: i32) -> (i32, i32, i32) {
    %c0_i32 = arith.constant 0 : i32
    %c0_i32_0 = arith.constant 0 : i32
    return %arg0, %c0_i32, %arg1 : i32, i32, i32
  }
  func.func @transform_1(%arg0: i32, %arg1: i32) -> (i32, i32, i32) {
    %c0_i32 = arith.constant 0 : i32
    %c0_i32_0 = arith.constant 0 : i32
    %c0_i32_1 = arith.constant 0 : i32
    return %arg0, %c0_i32, %c0_i32_0 : i32, i32, i32
  }
  func.func @transform_2(%arg0: i32, %arg1: i32) -> (i32, i32, i32) {
    %c0_i32 = arith.constant 0 : i32
    %c0_i32_0 = arith.constant 0 : i32
    return %arg0, %c0_i32, %arg1 : i32, i32, i32
  }
  func.func @transform_3(%arg0: i32, %arg1: i32) -> (i32, i32, i32) {
    %c0_i32 = arith.constant 0 : i32
    %c0_i32_0 = arith.constant 0 : i32
    %c0_i32_1 = arith.constant 0 : i32
    return %arg0, %c0_i32, %c0_i32_0 : i32, i32, i32
  }
}

module attributes {stable_mosaic.version = 11 : i64} {
  func.func @_prep0_kernel(%arg0: memref<16x4xf32, #tpu.memory_space<vmem>>, %arg1: memref<16x32xf32, #tpu.memory_space<vmem>>, %arg2: memref<1x4xf32, #tpu.memory_space<vmem>>, %arg3: memref<1x4xf32, #tpu.memory_space<vmem>>, %arg4: memref<4x64xbf16, #tpu.memory_space<vmem>>, %arg5: memref<32x64xbf16, #tpu.memory_space<vmem>>, %arg6: memref<1x32xf32, #tpu.memory_space<vmem>>, %arg7: memref<16x32xbf16, #tpu.memory_space<vmem>>, %arg8: memref<16x32xf32, #tpu.memory_space<vmem>>) attributes {dimension_semantics = [], scalar_prefetch = 0 : i64, scratch_operands = 0 : i64, tpu.core_type = #tpu.core_type<tc>} {
    %c0 = arith.constant 0 : index
    %c0_0 = arith.constant 0 : index
    %0 = vector.load %arg0[%c0, %c0_0] : memref<16x4xf32, #tpu.memory_space<vmem>>, vector<16x4xf32>
    %c0_1 = arith.constant 0 : index
    %c0_2 = arith.constant 0 : index
    %1 = vector.load %arg2[%c0_1, %c0_2] : memref<1x4xf32, #tpu.memory_space<vmem>>, vector<1x4xf32>
    %c0_3 = arith.constant 0 : index
    %c0_4 = arith.constant 0 : index
    %2 = vector.load %arg3[%c0_3, %c0_4] : memref<1x4xf32, #tpu.memory_space<vmem>>, vector<1x4xf32>
    %cst = arith.constant dense<0.000000e+00> : vector<4xf32>
    %3 = vector.multi_reduction <add>, %0, %cst [0] : vector<16x4xf32> to vector<4xf32>
    %4 = vector.shape_cast %3 : vector<4xf32> to vector<1x4xf32>
    %cst_5 = arith.constant 1.600000e+01 : f32
    %5 = vector.broadcast %cst_5 : f32 to vector<1x4xf32>
    %6 = arith.divf %4, %5 : vector<1x4xf32>
    %7 = vector.broadcast %6 : vector<1x4xf32> to vector<16x4xf32>
    %8 = arith.subf %0, %7 : vector<16x4xf32>
    %9 = arith.mulf %8, %8 : vector<16x4xf32>
    %cst_6 = arith.constant dense<0.000000e+00> : vector<4xf32>
    %10 = vector.multi_reduction <add>, %9, %cst_6 [0] : vector<16x4xf32> to vector<4xf32>
    %11 = vector.shape_cast %10 : vector<4xf32> to vector<1x4xf32>
    %cst_7 = arith.constant 1.600000e+01 : f32
    %12 = vector.broadcast %cst_7 : f32 to vector<1x4xf32>
    %13 = arith.divf %11, %12 : vector<1x4xf32>
    %14 = vector.broadcast %6 : vector<1x4xf32> to vector<16x4xf32>
    %15 = arith.subf %0, %14 : vector<16x4xf32>
    %cst_8 = arith.constant 9.99999974E-6 : f32
    %16 = vector.broadcast %cst_8 : f32 to vector<1x4xf32>
    %17 = arith.addf %13, %16 : vector<1x4xf32>
    %18 = math.rsqrt %17 : vector<1x4xf32>
    %19 = vector.broadcast %18 : vector<1x4xf32> to vector<16x4xf32>
    %20 = arith.mulf %15, %19 : vector<16x4xf32>
    %21 = vector.broadcast %1 : vector<1x4xf32> to vector<16x4xf32>
    %22 = arith.mulf %20, %21 : vector<16x4xf32>
    %23 = vector.broadcast %2 : vector<1x4xf32> to vector<16x4xf32>
    %24 = arith.addf %22, %23 : vector<16x4xf32>
    %cst_9 = arith.constant 0.000000e+00 : f32
    %25 = vector.broadcast %cst_9 : f32 to vector<16x4xf32>
    %26 = arith.maximumf %24, %25 : vector<16x4xf32>
    %27 = arith.truncf %26 : vector<16x4xf32> to vector<16x4xbf16>
    %c0_10 = arith.constant 0 : index
    %c0_11 = arith.constant 0 : index
    %28 = vector.load %arg1[%c0_10, %c0_11] : memref<16x32xf32, #tpu.memory_space<vmem>>, vector<16x32xf32>
    %29 = arith.truncf %28 : vector<16x32xf32> to vector<16x32xbf16>
    %c0_12 = arith.constant 0 : index
    %c0_13 = arith.constant 0 : index
    %30 = vector.load %arg4[%c0_12, %c0_13] : memref<4x64xbf16, #tpu.memory_space<vmem>>, vector<4x64xbf16>
    %cst_14 = arith.constant dense<0.000000e+00> : vector<16x64xf32>
    %31 = tpu.matmul %27, %30, %cst_14 {dimension_numbers = #tpu.dot_dimension_numbers<[1], [0], [0], [1], [0, 0, 1, 1], [], []>} : vector<16x4xbf16>, vector<4x64xbf16>, vector<16x64xf32> -> vector<16x64xf32>
    %c0_15 = arith.constant 0 : index
    %c0_16 = arith.constant 0 : index
    %32 = vector.load %arg5[%c0_15, %c0_16] : memref<32x64xbf16, #tpu.memory_space<vmem>>, vector<32x64xbf16>
    %cst_17 = arith.constant dense<0.000000e+00> : vector<16x64xf32>
    %33 = tpu.matmul %29, %32, %cst_17 {dimension_numbers = #tpu.dot_dimension_numbers<[1], [0], [0], [1], [0, 0, 1, 1], [], []>} : vector<16x32xbf16>, vector<32x64xbf16>, vector<16x64xf32> -> vector<16x64xf32>
    %34 = arith.addf %31, %33 : vector<16x64xf32>
    %35 = vector.extract_strided_slice %34 {offsets = [0, 0], sizes = [16, 32], strides = [1, 1]} : vector<16x64xf32> to vector<16x32xf32>
    %36 = arith.truncf %35 : vector<16x32xf32> to vector<16x32xbf16>
    %c0_18 = arith.constant 0 : index
    %c0_19 = arith.constant 0 : index
    %37 = vector.load %arg7[%c0_18, %c0_19] : memref<16x32xbf16, #tpu.memory_space<vmem>>, vector<16x32xbf16>
    tpu.vector_store %arg7[%c0_18, %c0_19], %36 {strides = array<i32>} : memref<16x32xbf16, #tpu.memory_space<vmem>>, vector<16x32xbf16>,
    %38 = vector.extract_strided_slice %34 {offsets = [0, 32], sizes = [16, 32], strides = [1, 1]} : vector<16x64xf32> to vector<16x32xf32>
    %c0_20 = arith.constant 0 : index
    %c0_21 = arith.constant 0 : index
    %39 = vector.load %arg6[%c0_20, %c0_21] : memref<1x32xf32, #tpu.memory_space<vmem>>, vector<1x32xf32>
    %40 = vector.broadcast %39 : vector<1x32xf32> to vector<16x32xf32>
    %41 = arith.addf %38, %40 : vector<16x32xf32>
    %c0_22 = arith.constant 0 : index
    %c0_23 = arith.constant 0 : index
    %42 = vector.load %arg8[%c0_22, %c0_23] : memref<16x32xf32, #tpu.memory_space<vmem>>, vector<16x32xf32>
    tpu.vector_store %arg8[%c0_22, %c0_23], %41 {strides = array<i32>} : memref<16x32xf32, #tpu.memory_space<vmem>>, vector<16x32xf32>,
    return
  }
}

module attributes {stable_mosaic.version = 11 : i64} {
  func.func @_merger_kernel(%arg0: memref<16x32xf32, #tpu.memory_space<vmem>>, %arg1: memref<16x16xf32, #tpu.memory_space<vmem>>, %arg2: memref<1x32xf32, #tpu.memory_space<vmem>>, %arg3: memref<1x32xf32, #tpu.memory_space<vmem>>, %arg4: memref<32x32xbf16, #tpu.memory_space<vmem>>, %arg5: memref<16x32xbf16, #tpu.memory_space<vmem>>, %arg6: memref<1x32xf32, #tpu.memory_space<vmem>>, %arg7: memref<1x32xf32, #tpu.memory_space<vmem>>, %arg8: memref<1x32xf32, #tpu.memory_space<vmem>>, %arg9: memref<16x32xbf16, #tpu.memory_space<vmem>>) attributes {dimension_semantics = [], scalar_prefetch = 0 : i64, scratch_operands = 0 : i64, tpu.core_type = #tpu.core_type<tc>} {
    %c0 = arith.constant 0 : index
    %c0_0 = arith.constant 0 : index
    %0 = vector.load %arg0[%c0, %c0_0] : memref<16x32xf32, #tpu.memory_space<vmem>>, vector<16x32xf32>
    %c0_1 = arith.constant 0 : index
    %c0_2 = arith.constant 0 : index
    %1 = vector.load %arg2[%c0_1, %c0_2] : memref<1x32xf32, #tpu.memory_space<vmem>>, vector<1x32xf32>
    %c0_3 = arith.constant 0 : index
    %c0_4 = arith.constant 0 : index
    %2 = vector.load %arg3[%c0_3, %c0_4] : memref<1x32xf32, #tpu.memory_space<vmem>>, vector<1x32xf32>
    %cst = arith.constant dense<0.000000e+00> : vector<32xf32>
    %3 = vector.multi_reduction <add>, %0, %cst [0] : vector<16x32xf32> to vector<32xf32>
    %4 = vector.shape_cast %3 : vector<32xf32> to vector<1x32xf32>
    %cst_5 = arith.constant 1.600000e+01 : f32
    %5 = vector.broadcast %cst_5 : f32 to vector<1x32xf32>
    %6 = arith.divf %4, %5 : vector<1x32xf32>
    %7 = vector.broadcast %6 : vector<1x32xf32> to vector<16x32xf32>
    %8 = arith.subf %0, %7 : vector<16x32xf32>
    %9 = arith.mulf %8, %8 : vector<16x32xf32>
    %cst_6 = arith.constant dense<0.000000e+00> : vector<32xf32>
    %10 = vector.multi_reduction <add>, %9, %cst_6 [0] : vector<16x32xf32> to vector<32xf32>
    %11 = vector.shape_cast %10 : vector<32xf32> to vector<1x32xf32>
    %cst_7 = arith.constant 1.600000e+01 : f32
    %12 = vector.broadcast %cst_7 : f32 to vector<1x32xf32>
    %13 = arith.divf %11, %12 : vector<1x32xf32>
    %14 = vector.broadcast %6 : vector<1x32xf32> to vector<16x32xf32>
    %15 = arith.subf %0, %14 : vector<16x32xf32>
    %cst_8 = arith.constant 9.99999974E-6 : f32
    %16 = vector.broadcast %cst_8 : f32 to vector<1x32xf32>
    %17 = arith.addf %13, %16 : vector<1x32xf32>
    %18 = math.rsqrt %17 : vector<1x32xf32>
    %19 = vector.broadcast %18 : vector<1x32xf32> to vector<16x32xf32>
    %20 = arith.mulf %15, %19 : vector<16x32xf32>
    %21 = vector.broadcast %1 : vector<1x32xf32> to vector<16x32xf32>
    %22 = arith.mulf %20, %21 : vector<16x32xf32>
    %23 = vector.broadcast %2 : vector<1x32xf32> to vector<16x32xf32>
    %24 = arith.addf %22, %23 : vector<16x32xf32>
    %cst_9 = arith.constant 0.000000e+00 : f32
    %25 = vector.broadcast %cst_9 : f32 to vector<16x32xf32>
    %26 = arith.maximumf %24, %25 : vector<16x32xf32>
    %27 = arith.truncf %26 : vector<16x32xf32> to vector<16x32xbf16>
    %c0_10 = arith.constant 0 : index
    %c0_11 = arith.constant 0 : index
    %28 = vector.load %arg1[%c0_10, %c0_11] : memref<16x16xf32, #tpu.memory_space<vmem>>, vector<16x16xf32>
    %29 = arith.truncf %28 : vector<16x16xf32> to vector<16x16xbf16>
    %c0_12 = arith.constant 0 : index
    %c0_13 = arith.constant 0 : index
    %30 = vector.load %arg4[%c0_12, %c0_13] : memref<32x32xbf16, #tpu.memory_space<vmem>>, vector<32x32xbf16>
    %cst_14 = arith.constant dense<0.000000e+00> : vector<16x32xf32>
    %31 = tpu.matmul %27, %30, %cst_14 {dimension_numbers = #tpu.dot_dimension_numbers<[1], [0], [0], [1], [0, 0, 1, 1], [], []>} : vector<16x32xbf16>, vector<32x32xbf16>, vector<16x32xf32> -> vector<16x32xf32>
    %c0_15 = arith.constant 0 : index
    %c0_16 = arith.constant 0 : index
    %32 = vector.load %arg5[%c0_15, %c0_16] : memref<16x32xbf16, #tpu.memory_space<vmem>>, vector<16x32xbf16>
    %cst_17 = arith.constant dense<0.000000e+00> : vector<16x32xf32>
    %33 = tpu.matmul %29, %32, %cst_17 {dimension_numbers = #tpu.dot_dimension_numbers<[1], [0], [0], [1], [0, 0, 1, 1], [], []>} : vector<16x16xbf16>, vector<16x32xbf16>, vector<16x32xf32> -> vector<16x32xf32>
    %34 = arith.addf %31, %33 : vector<16x32xf32>
    %c0_18 = arith.constant 0 : index
    %c0_19 = arith.constant 0 : index
    %35 = vector.load %arg6[%c0_18, %c0_19] : memref<1x32xf32, #tpu.memory_space<vmem>>, vector<1x32xf32>
    %36 = vector.broadcast %35 : vector<1x32xf32> to vector<16x32xf32>
    %37 = arith.addf %34, %36 : vector<16x32xf32>
    %c0_20 = arith.constant 0 : index
    %c0_21 = arith.constant 0 : index
    %38 = vector.load %arg7[%c0_20, %c0_21] : memref<1x32xf32, #tpu.memory_space<vmem>>, vector<1x32xf32>
    %c0_22 = arith.constant 0 : index
    %c0_23 = arith.constant 0 : index
    %39 = vector.load %arg8[%c0_22, %c0_23] : memref<1x32xf32, #tpu.memory_space<vmem>>, vector<1x32xf32>
    %cst_24 = arith.constant dense<0.000000e+00> : vector<32xf32>
    %40 = vector.multi_reduction <add>, %37, %cst_24 [0] : vector<16x32xf32> to vector<32xf32>
    %41 = vector.shape_cast %40 : vector<32xf32> to vector<1x32xf32>
    %cst_25 = arith.constant 1.600000e+01 : f32
    %42 = vector.broadcast %cst_25 : f32 to vector<1x32xf32>
    %43 = arith.divf %41, %42 : vector<1x32xf32>
    %44 = vector.broadcast %43 : vector<1x32xf32> to vector<16x32xf32>
    %45 = arith.subf %37, %44 : vector<16x32xf32>
    %46 = arith.mulf %45, %45 : vector<16x32xf32>
    %cst_26 = arith.constant dense<0.000000e+00> : vector<32xf32>
    %47 = vector.multi_reduction <add>, %46, %cst_26 [0] : vector<16x32xf32> to vector<32xf32>
    %48 = vector.shape_cast %47 : vector<32xf32> to vector<1x32xf32>
    %cst_27 = arith.constant 1.600000e+01 : f32
    %49 = vector.broadcast %cst_27 : f32 to vector<1x32xf32>
    %50 = arith.divf %48, %49 : vector<1x32xf32>
    %51 = vector.broadcast %43 : vector<1x32xf32> to vector<16x32xf32>
    %52 = arith.subf %37, %51 : vector<16x32xf32>
    %cst_28 = arith.constant 9.99999974E-6 : f32
    %53 = vector.broadcast %cst_28 : f32 to vector<1x32xf32>
    %54 = arith.addf %50, %53 : vector<1x32xf32>
    %55 = math.rsqrt %54 : vector<1x32xf32>
    %56 = vector.broadcast %55 : vector<1x32xf32> to vector<16x32xf32>
    %57 = arith.mulf %52, %56 : vector<16x32xf32>
    %58 = vector.broadcast %38 : vector<1x32xf32> to vector<16x32xf32>
    %59 = arith.mulf %57, %58 : vector<16x32xf32>
    %60 = vector.broadcast %39 : vector<1x32xf32> to vector<16x32xf32>
    %61 = arith.addf %59, %60 : vector<16x32xf32>
    %cst_29 = arith.constant 0.000000e+00 : f32
    %62 = vector.broadcast %cst_29 : f32 to vector<16x32xf32>
    %63 = arith.maximumf %61, %62 : vector<16x32xf32>
    %64 = arith.truncf %63 : vector<16x32xf32> to vector<16x32xbf16>
    %c0_30 = arith.constant 0 : index
    %c0_31 = arith.constant 0 : index
    %65 = vector.load %arg9[%c0_30, %c0_31] : memref<16x32xbf16, #tpu.memory_space<vmem>>, vector<16x32xbf16>
    tpu.vector_store %arg9[%c0_30, %c0_31], %64 {strides = array<i32>} : memref<16x32xbf16, #tpu.memory_space<vmem>>, vector<16x32xbf16>,
    return
  }
}

module attributes {stable_mosaic.version = 11 : i64} {
  func.func @kernel(%arg0: i32, %arg1: i32, %arg2: memref<1x8x64xbf16, #tpu.memory_space<vmem>>, %arg3: memref<1x8x1xf32, #tpu.memory_space<vmem>>, %arg4: memref<1x32x64xf32, #tpu.memory_space<vmem>>, %arg5: memref<1x16x64xf32, #tpu.memory_space<vmem>>, %arg6: memref<1x8x32xf32, #tpu.memory_space<vmem>>, %arg7: memref<1x8x16xf32, #tpu.memory_space<vmem>>) attributes {dimension_semantics = [#tpu.dimension_semantics<parallel>, #tpu.dimension_semantics<arbitrary>], iteration_bounds = array<i64: 2, 1>, scalar_prefetch = 0 : i64, scratch_operands = 0 : i64, tpu.core_type = #tpu.core_type<tc>, window_params = [{transform_indices = @transform_0, window_bounds = array<i64: 1, 8, 64>}, {transform_indices = @transform_1, window_bounds = array<i64: 1, 8, 1>}, {transform_indices = @transform_2, window_bounds = array<i64: 1, 32, 64>}, {transform_indices = @transform_3, window_bounds = array<i64: 1, 16, 64>}, {transform_indices = @transform_4, window_bounds = array<i64: 1, 8, 32>}, {transform_indices = @transform_5, window_bounds = array<i64: 1, 8, 16>}]} {
    %c0_i32 = arith.constant 0 : i32
    %0 = arith.cmpi eq, %arg1, %c0_i32 : i32
    %1 = arith.extui %0 : i1 to i32
    %c0_i32_0 = arith.constant 0 : i32
    %2 = arith.cmpi ne, %1, %c0_i32_0 : i32
    scf.if %2 {
      %cst_24 = arith.constant 0.000000e+00 : f32
      %28 = vector.broadcast %cst_24 : f32 to vector<1x8x32xf32>
      %c0_25 = arith.constant 0 : index
      %c0_26 = arith.constant 0 : index
      %c0_27 = arith.constant 0 : index
      %29 = vector.load %arg6[%c0_25, %c0_26, %c0_27] : memref<1x8x32xf32, #tpu.memory_space<vmem>>, vector<1x8x32xf32>
      tpu.vector_store %arg6[%c0_25, %c0_26, %c0_27], %28 {strides = array<i32>} : memref<1x8x32xf32, #tpu.memory_space<vmem>>, vector<1x8x32xf32>,
      %cst_28 = arith.constant 0.000000e+00 : f32
      %30 = vector.broadcast %cst_28 : f32 to vector<1x8x16xf32>
      %c0_29 = arith.constant 0 : index
      %c0_30 = arith.constant 0 : index
      %c0_31 = arith.constant 0 : index
      %31 = vector.load %arg7[%c0_29, %c0_30, %c0_31] : memref<1x8x16xf32, #tpu.memory_space<vmem>>, vector<1x8x16xf32>
      tpu.vector_store %arg7[%c0_29, %c0_30, %c0_31], %30 {strides = array<i32>} : memref<1x8x16xf32, #tpu.memory_space<vmem>>, vector<1x8x16xf32>,
    } else {
    }
    %c0 = arith.constant 0 : index
    %c0_1 = arith.constant 0 : index
    %c0_2 = arith.constant 0 : index
    %3 = vector.load %arg2[%c0, %c0_1, %c0_2] : memref<1x8x64xbf16, #tpu.memory_space<vmem>>, vector<1x8x64xbf16>
    %4 = vector.shape_cast %3 : vector<1x8x64xbf16> to vector<8x64xbf16>
    %c0_3 = arith.constant 0 : index
    %c0_4 = arith.constant 0 : index
    %c0_5 = arith.constant 0 : index
    %5 = vector.load %arg4[%c0_3, %c0_4, %c0_5] : memref<1x32x64xf32, #tpu.memory_space<vmem>>, vector<1x32x64xf32>
    %6 = vector.shape_cast %5 : vector<1x32x64xf32> to vector<32x64xf32>
    %7 = arith.truncf %6 : vector<32x64xf32> to vector<32x64xbf16>
    %c0_6 = arith.constant 0 : index
    %c0_7 = arith.constant 0 : index
    %c0_8 = arith.constant 0 : index
    %8 = vector.load %arg6[%c0_6, %c0_7, %c0_8] : memref<1x8x32xf32, #tpu.memory_space<vmem>>, vector<1x8x32xf32>
    %9 = vector.shape_cast %8 : vector<1x8x32xf32> to vector<8x32xf32>
    %cst = arith.constant dense<0.000000e+00> : vector<8x32xf32>
    %10 = tpu.matmul %4, %7, %cst {dimension_numbers = #tpu.dot_dimension_numbers<[1], [1], [0], [0], [0, 0, 1, 0], [], []>} : vector<8x64xbf16>, vector<32x64xbf16>, vector<8x32xf32> -> vector<8x32xf32>
    %11 = arith.addf %9, %10 : vector<8x32xf32>
    %c0_9 = arith.constant 0 : index
    %c0_10 = arith.constant 0 : index
    %c0_11 = arith.constant 0 : index
    %12 = vector.load %arg6[%c0_9, %c0_10, %c0_11] : memref<1x8x32xf32, #tpu.memory_space<vmem>>, vector<1x8x32xf32>
    %13 = vector.shape_cast %12 : vector<1x8x32xf32> to vector<8x32xf32>
    %14 = vector.shape_cast %11 : vector<8x32xf32> to vector<1x8x32xf32>
    tpu.vector_store %arg6[%c0_9, %c0_10, %c0_11], %14 {strides = array<i32>} : memref<1x8x32xf32, #tpu.memory_space<vmem>>, vector<1x8x32xf32>,
    %c0_12 = arith.constant 0 : index
    %c0_13 = arith.constant 0 : index
    %c0_14 = arith.constant 0 : index
    %15 = vector.load %arg5[%c0_12, %c0_13, %c0_14] : memref<1x16x64xf32, #tpu.memory_space<vmem>>, vector<1x16x64xf32>
    %16 = vector.shape_cast %15 : vector<1x16x64xf32> to vector<16x64xf32>
    %17 = arith.truncf %16 : vector<16x64xf32> to vector<16x64xbf16>
    %c0_15 = arith.constant 0 : index
    %c0_16 = arith.constant 0 : index
    %c0_17 = arith.constant 0 : index
    %18 = vector.load %arg7[%c0_15, %c0_16, %c0_17] : memref<1x8x16xf32, #tpu.memory_space<vmem>>, vector<1x8x16xf32>
    %19 = vector.shape_cast %18 : vector<1x8x16xf32> to vector<8x16xf32>
    %cst_18 = arith.constant dense<0.000000e+00> : vector<8x16xf32>
    %20 = tpu.matmul %4, %17, %cst_18 {dimension_numbers = #tpu.dot_dimension_numbers<[1], [1], [0], [0], [0, 0, 1, 0], [], []>} : vector<8x64xbf16>, vector<16x64xbf16>, vector<8x16xf32> -> vector<8x16xf32>
    %21 = arith.addf %19, %20 : vector<8x16xf32>
    %c0_19 = arith.constant 0 : index
    %c0_20 = arith.constant 0 : index
    %c0_21 = arith.constant 0 : index
    %22 = vector.load %arg7[%c0_19, %c0_20, %c0_21] : memref<1x8x16xf32, #tpu.memory_space<vmem>>, vector<1x8x16xf32>
    %23 = vector.shape_cast %22 : vector<1x8x16xf32> to vector<8x16xf32>
    %24 = vector.shape_cast %21 : vector<8x16xf32> to vector<1x8x16xf32>
    tpu.vector_store %arg7[%c0_19, %c0_20, %c0_21], %24 {strides = array<i32>} : memref<1x8x16xf32, #tpu.memory_space<vmem>>, vector<1x8x16xf32>,
    %c0_i32_22 = arith.constant 0 : i32
    %25 = arith.cmpi eq, %arg1, %c0_i32_22 : i32
    %26 = arith.extui %25 : i1 to i32
    %c0_i32_23 = arith.constant 0 : i32
    %27 = arith.cmpi ne, %26, %c0_i32_23 : i32
    scf.if %27 {
      %c0_24 = arith.constant 0 : index
      %c0_25 = arith.constant 0 : index
      %c0_26 = arith.constant 0 : index
      %28 = vector.load %arg3[%c0_24, %c0_25, %c0_26] : memref<1x8x1xf32, #tpu.memory_space<vmem>>, vector<1x8x1xf32>
      %29 = vector.shape_cast %28 : vector<1x8x1xf32> to vector<8x1xf32>
      %cst_27 = arith.constant 1.000000e+00 : f32
      %30 = vector.broadcast %cst_27 : f32 to vector<8x1xf32>
      %31 = arith.maximumf %29, %30 : vector<8x1xf32>
      %cst_28 = arith.constant 1.000000e+00 : f32
      %32 = vector.broadcast %cst_28 : f32 to vector<8x1xf32>
      %33 = arith.divf %32, %31 : vector<8x1xf32>
      %c0_29 = arith.constant 0 : index
      %c0_30 = arith.constant 0 : index
      %c0_31 = arith.constant 0 : index
      %34 = vector.load %arg6[%c0_29, %c0_30, %c0_31] : memref<1x8x32xf32, #tpu.memory_space<vmem>>, vector<1x8x32xf32>
      %35 = vector.shape_cast %34 : vector<1x8x32xf32> to vector<8x32xf32>
      %36 = vector.broadcast %33 : vector<8x1xf32> to vector<8x32xf32>
      %37 = arith.mulf %35, %36 : vector<8x32xf32>
      %c0_32 = arith.constant 0 : index
      %c0_33 = arith.constant 0 : index
      %c0_34 = arith.constant 0 : index
      %38 = vector.load %arg6[%c0_32, %c0_33, %c0_34] : memref<1x8x32xf32, #tpu.memory_space<vmem>>, vector<1x8x32xf32>
      %39 = vector.shape_cast %38 : vector<1x8x32xf32> to vector<8x32xf32>
      %40 = vector.shape_cast %37 : vector<8x32xf32> to vector<1x8x32xf32>
      tpu.vector_store %arg6[%c0_32, %c0_33, %c0_34], %40 {strides = array<i32>} : memref<1x8x32xf32, #tpu.memory_space<vmem>>, vector<1x8x32xf32>,
      %c0_35 = arith.constant 0 : index
      %c0_36 = arith.constant 0 : index
      %c0_37 = arith.constant 0 : index
      %41 = vector.load %arg7[%c0_35, %c0_36, %c0_37] : memref<1x8x16xf32, #tpu.memory_space<vmem>>, vector<1x8x16xf32>
      %42 = vector.shape_cast %41 : vector<1x8x16xf32> to vector<8x16xf32>
      %43 = vector.broadcast %33 : vector<8x1xf32> to vector<8x16xf32>
      %44 = arith.mulf %42, %43 : vector<8x16xf32>
      %c0_38 = arith.constant 0 : index
      %c0_39 = arith.constant 0 : index
      %c0_40 = arith.constant 0 : index
      %45 = vector.load %arg7[%c0_38, %c0_39, %c0_40] : memref<1x8x16xf32, #tpu.memory_space<vmem>>, vector<1x8x16xf32>
      %46 = vector.shape_cast %45 : vector<1x8x16xf32> to vector<8x16xf32>
      %47 = vector.shape_cast %44 : vector<8x16xf32> to vector<1x8x16xf32>
      tpu.vector_store %arg7[%c0_38, %c0_39, %c0_40], %47 {strides = array<i32>} : memref<1x8x16xf32, #tpu.memory_space<vmem>>, vector<1x8x16xf32>,
    } else {
    }
    return
  }
  func.func @transform_0(%arg0: i32, %arg1: i32) -> (i32, i32, i32) {
    %c0_i32 = arith.constant 0 : i32
    %c0_i32_0 = arith.constant 0 : i32
    return %arg0, %c0_i32, %arg1 : i32, i32, i32
  }
  func.func @transform_1(%arg0: i32, %arg1: i32) -> (i32, i32, i32) {
    %c0_i32 = arith.constant 0 : i32
    %c0_i32_0 = arith.constant 0 : i32
    %c0_i32_1 = arith.constant 0 : i32
    return %arg0, %c0_i32, %c0_i32_0 : i32, i32, i32
  }
  func.func @transform_2(%arg0: i32, %arg1: i32) -> (i32, i32, i32) {
    %c0_i32 = arith.constant 0 : i32
    %c0_i32_0 = arith.constant 0 : i32
    return %arg0, %c0_i32, %arg1 : i32, i32, i32
  }
  func.func @transform_3(%arg0: i32, %arg1: i32) -> (i32, i32, i32) {
    %c0_i32 = arith.constant 0 : i32
    %c0_i32_0 = arith.constant 0 : i32
    return %arg0, %c0_i32, %arg1 : i32, i32, i32
  }
  func.func @transform_4(%arg0: i32, %arg1: i32) -> (i32, i32, i32) {
    %c0_i32 = arith.constant 0 : i32
    %c0_i32_0 = arith.constant 0 : i32
    %c0_i32_1 = arith.constant 0 : i32
    return %arg0, %c0_i32, %c0_i32_0 : i32, i32, i32
  }
  func.func @transform_5(%arg0: i32, %arg1: i32) -> (i32, i32, i32) {
    %c0_i32 = arith.constant 0 : i32
    %c0_i32_0 = arith.constant 0 : i32
    %c0_i32_1 = arith.constant 0 : i32
    return %arg0, %c0_i32, %c0_i32_0 : i32, i32, i32
  }
}

module attributes {stable_mosaic.version = 11 : i64} {
  func.func @_agg0_kernel(%arg0: i32, %arg1: memref<16x16xbf16, #tpu.memory_space<vmem>>, %arg2: memref<16x16xbf16, #tpu.memory_space<vmem>>, %arg3: memref<16x32xbf16, #tpu.memory_space<vmem>>, %arg4: memref<16x32xf32, #tpu.memory_space<vmem>>, %arg5: memref<16x32xf32, #tpu.memory_space<vmem>>) attributes {dimension_semantics = [#tpu.dimension_semantics<parallel>], iteration_bounds = array<i64: 1>, scalar_prefetch = 0 : i64, scratch_operands = 0 : i64, tpu.core_type = #tpu.core_type<tc>, window_params = [{transform_indices = @transform_0, window_bounds = array<i64: 16, 16>}, {transform_indices = @transform_1, window_bounds = array<i64: 16, 16>}, {pipeline_mode = #tpu.pipeline_mode<synchronous>, transform_indices = @transform_2, window_bounds = array<i64: 16, 32>}, {transform_indices = @transform_3, window_bounds = array<i64: 16, 32>}, {transform_indices = @transform_4, window_bounds = array<i64: 16, 32>}]} {
    %c0 = arith.constant 0 : index
    %c0_0 = arith.constant 0 : index
    %0 = vector.load %arg1[%c0, %c0_0] : memref<16x16xbf16, #tpu.memory_space<vmem>>, vector<16x16xbf16>
    %c0_1 = arith.constant 0 : index
    %c0_2 = arith.constant 0 : index
    %1 = vector.load %arg3[%c0_1, %c0_2] : memref<16x32xbf16, #tpu.memory_space<vmem>>, vector<16x32xbf16>
    %cst = arith.constant dense<0.000000e+00> : vector<16x32xf32>
    %2 = tpu.matmul %0, %1, %cst {dimension_numbers = #tpu.dot_dimension_numbers<[1], [0], [0], [1], [0, 0, 1, 1], [], []>} : vector<16x16xbf16>, vector<16x32xbf16>, vector<16x32xf32> -> vector<16x32xf32>
    %c0_3 = arith.constant 0 : index
    %c0_4 = arith.constant 0 : index
    %3 = vector.load %arg2[%c0_3, %c0_4] : memref<16x16xbf16, #tpu.memory_space<vmem>>, vector<16x16xbf16>
    %c0_5 = arith.constant 0 : index
    %c0_6 = arith.constant 0 : index
    %4 = vector.load %arg3[%c0_5, %c0_6] : memref<16x32xbf16, #tpu.memory_space<vmem>>, vector<16x32xbf16>
    %cst_7 = arith.constant dense<0.000000e+00> : vector<16x32xf32>
    %5 = tpu.matmul %3, %4, %cst_7 {dimension_numbers = #tpu.dot_dimension_numbers<[1], [0], [0], [1], [0, 0, 1, 1], [], []>} : vector<16x16xbf16>, vector<16x32xbf16>, vector<16x32xf32> -> vector<16x32xf32>
    %6 = tpu.iota {dimensions = array<i32: 1>} : vector<16x32xi32>
    %c16_i32 = arith.constant 16 : i32
    %7 = vector.broadcast %c16_i32 : i32 to vector<16x32xi32>
    %8 = arith.cmpi slt, %6, %7 : vector<16x32xi32>
    %9 = arith.select %8, %2, %5 : vector<16x32xi1>, vector<16x32xf32>
    %c0_8 = arith.constant 0 : index
    %c0_9 = arith.constant 0 : index
    %10 = vector.load %arg4[%c0_8, %c0_9] : memref<16x32xf32, #tpu.memory_space<vmem>>, vector<16x32xf32>
    %11 = arith.addf %9, %10 : vector<16x32xf32>
    %c0_10 = arith.constant 0 : index
    %c0_11 = arith.constant 0 : index
    %12 = vector.load %arg5[%c0_10, %c0_11] : memref<16x32xf32, #tpu.memory_space<vmem>>, vector<16x32xf32>
    tpu.vector_store %arg5[%c0_10, %c0_11], %11 {strides = array<i32>} : memref<16x32xf32, #tpu.memory_space<vmem>>, vector<16x32xf32>,
    return
  }
  func.func @transform_0(%arg0: i32) -> (i32, i32) {
    %c0_i32 = arith.constant 0 : i32
    %c0_i32_0 = arith.constant 0 : i32
    return %arg0, %c0_i32 : i32, i32
  }
  func.func @transform_1(%arg0: i32) -> (i32, i32) {
    %c0_i32 = arith.constant 0 : i32
    %c0_i32_0 = arith.constant 0 : i32
    return %arg0, %c0_i32 : i32, i32
  }
  func.func @transform_2(%arg0: i32) -> (i32, i32) {
    %c0_i32 = arith.constant 0 : i32
    %c0_i32_0 = arith.constant 0 : i32
    %c0_i32_1 = arith.constant 0 : i32
    return %c0_i32, %c0_i32_0 : i32, i32
  }
  func.func @transform_3(%arg0: i32) -> (i32, i32) {
    %c0_i32 = arith.constant 0 : i32
    %c0_i32_0 = arith.constant 0 : i32
    return %arg0, %c0_i32 : i32, i32
  }
  func.func @transform_4(%arg0: i32) -> (i32, i32) {
    %c0_i32 = arith.constant 0 : i32
    %c0_i32_0 = arith.constant 0 : i32
    return %arg0, %c0_i32 : i32, i32
  }
}

module attributes {stable_mosaic.version = 11 : i64} {
  func.func @_aggi_kernel(%arg0: i32, %arg1: memref<16x16xbf16, #tpu.memory_space<vmem>>, %arg2: memref<16x16xbf16, #tpu.memory_space<vmem>>, %arg3: memref<16x32xbf16, #tpu.memory_space<vmem>>, %arg4: memref<16x32xbf16, #tpu.memory_space<vmem>>, %arg5: memref<32x64xbf16, #tpu.memory_space<vmem>>, %arg6: memref<32x64xbf16, #tpu.memory_space<vmem>>, %arg7: memref<32x64xbf16, #tpu.memory_space<vmem>>, %arg8: memref<1x64xf32, #tpu.memory_space<vmem>>, %arg9: memref<16x64xf32, #tpu.memory_space<vmem>>) attributes {dimension_semantics = [#tpu.dimension_semantics<parallel>], iteration_bounds = array<i64: 1>, scalar_prefetch = 0 : i64, scratch_operands = 0 : i64, tpu.core_type = #tpu.core_type<tc>, window_params = [{transform_indices = @transform_0, window_bounds = array<i64: 16, 16>}, {transform_indices = @transform_1, window_bounds = array<i64: 16, 16>}, {pipeline_mode = #tpu.pipeline_mode<synchronous>, transform_indices = @transform_2, window_bounds = array<i64: 16, 32>}, {transform_indices = @transform_3, window_bounds = array<i64: 16, 32>}, {pipeline_mode = #tpu.pipeline_mode<synchronous>, transform_indices = @transform_4, window_bounds = array<i64: 32, 64>}, {pipeline_mode = #tpu.pipeline_mode<synchronous>, transform_indices = @transform_5, window_bounds = array<i64: 32, 64>}, {pipeline_mode = #tpu.pipeline_mode<synchronous>, transform_indices = @transform_6, window_bounds = array<i64: 32, 64>}, {pipeline_mode = #tpu.pipeline_mode<synchronous>, transform_indices = @transform_7, window_bounds = array<i64: 1, 64>}, {transform_indices = @transform_8, window_bounds = array<i64: 16, 64>}]} {
    %c0 = arith.constant 0 : index
    %c0_0 = arith.constant 0 : index
    %0 = vector.load %arg1[%c0, %c0_0] : memref<16x16xbf16, #tpu.memory_space<vmem>>, vector<16x16xbf16>
    %c0_1 = arith.constant 0 : index
    %c0_2 = arith.constant 0 : index
    %1 = vector.load %arg3[%c0_1, %c0_2] : memref<16x32xbf16, #tpu.memory_space<vmem>>, vector<16x32xbf16>
    %cst = arith.constant dense<0.000000e+00> : vector<16x32xf32>
    %2 = tpu.matmul %0, %1, %cst {dimension_numbers = #tpu.dot_dimension_numbers<[1], [0], [0], [1], [0, 0, 1, 1], [], []>} : vector<16x16xbf16>, vector<16x32xbf16>, vector<16x32xf32> -> vector<16x32xf32>
    %3 = arith.truncf %2 : vector<16x32xf32> to vector<16x32xbf16>
    %c0_3 = arith.constant 0 : index
    %c0_4 = arith.constant 0 : index
    %4 = vector.load %arg2[%c0_3, %c0_4] : memref<16x16xbf16, #tpu.memory_space<vmem>>, vector<16x16xbf16>
    %c0_5 = arith.constant 0 : index
    %c0_6 = arith.constant 0 : index
    %5 = vector.load %arg3[%c0_5, %c0_6] : memref<16x32xbf16, #tpu.memory_space<vmem>>, vector<16x32xbf16>
    %cst_7 = arith.constant dense<0.000000e+00> : vector<16x32xf32>
    %6 = tpu.matmul %4, %5, %cst_7 {dimension_numbers = #tpu.dot_dimension_numbers<[1], [0], [0], [1], [0, 0, 1, 1], [], []>} : vector<16x16xbf16>, vector<16x32xbf16>, vector<16x32xf32> -> vector<16x32xf32>
    %7 = arith.truncf %6 : vector<16x32xf32> to vector<16x32xbf16>
    %c0_8 = arith.constant 0 : index
    %c0_9 = arith.constant 0 : index
    %8 = vector.load %arg5[%c0_8, %c0_9] : memref<32x64xbf16, #tpu.memory_space<vmem>>, vector<32x64xbf16>
    %cst_10 = arith.constant dense<0.000000e+00> : vector<16x64xf32>
    %9 = tpu.matmul %3, %8, %cst_10 {dimension_numbers = #tpu.dot_dimension_numbers<[1], [0], [0], [1], [0, 0, 1, 1], [], []>} : vector<16x32xbf16>, vector<32x64xbf16>, vector<16x64xf32> -> vector<16x64xf32>
    %c0_11 = arith.constant 0 : index
    %c0_12 = arith.constant 0 : index
    %10 = vector.load %arg6[%c0_11, %c0_12] : memref<32x64xbf16, #tpu.memory_space<vmem>>, vector<32x64xbf16>
    %cst_13 = arith.constant dense<0.000000e+00> : vector<16x64xf32>
    %11 = tpu.matmul %7, %10, %cst_13 {dimension_numbers = #tpu.dot_dimension_numbers<[1], [0], [0], [1], [0, 0, 1, 1], [], []>} : vector<16x32xbf16>, vector<32x64xbf16>, vector<16x64xf32> -> vector<16x64xf32>
    %12 = arith.addf %9, %11 : vector<16x64xf32>
    %c0_14 = arith.constant 0 : index
    %c0_15 = arith.constant 0 : index
    %13 = vector.load %arg4[%c0_14, %c0_15] : memref<16x32xbf16, #tpu.memory_space<vmem>>, vector<16x32xbf16>
    %c0_16 = arith.constant 0 : index
    %c0_17 = arith.constant 0 : index
    %14 = vector.load %arg7[%c0_16, %c0_17] : memref<32x64xbf16, #tpu.memory_space<vmem>>, vector<32x64xbf16>
    %cst_18 = arith.constant dense<0.000000e+00> : vector<16x64xf32>
    %15 = tpu.matmul %13, %14, %cst_18 {dimension_numbers = #tpu.dot_dimension_numbers<[1], [0], [0], [1], [0, 0, 1, 1], [], []>} : vector<16x32xbf16>, vector<32x64xbf16>, vector<16x64xf32> -> vector<16x64xf32>
    %16 = arith.addf %12, %15 : vector<16x64xf32>
    %c0_19 = arith.constant 0 : index
    %c0_20 = arith.constant 0 : index
    %17 = vector.load %arg8[%c0_19, %c0_20] : memref<1x64xf32, #tpu.memory_space<vmem>>, vector<1x64xf32>
    %18 = vector.broadcast %17 : vector<1x64xf32> to vector<16x64xf32>
    %19 = arith.addf %16, %18 : vector<16x64xf32>
    %c0_21 = arith.constant 0 : index
    %c0_22 = arith.constant 0 : index
    %20 = vector.load %arg9[%c0_21, %c0_22] : memref<16x64xf32, #tpu.memory_space<vmem>>, vector<16x64xf32>
    tpu.vector_store %arg9[%c0_21, %c0_22], %19 {strides = array<i32>} : memref<16x64xf32, #tpu.memory_space<vmem>>, vector<16x64xf32>,
    return
  }
  func.func @transform_0(%arg0: i32) -> (i32, i32) {
    %c0_i32 = arith.constant 0 : i32
    %c0_i32_0 = arith.constant 0 : i32
    return %arg0, %c0_i32 : i32, i32
  }
  func.func @transform_1(%arg0: i32) -> (i32, i32) {
    %c0_i32 = arith.constant 0 : i32
    %c0_i32_0 = arith.constant 0 : i32
    return %arg0, %c0_i32 : i32, i32
  }
  func.func @transform_2(%arg0: i32) -> (i32, i32) {
    %c0_i32 = arith.constant 0 : i32
    %c0_i32_0 = arith.constant 0 : i32
    %c0_i32_1 = arith.constant 0 : i32
    return %c0_i32, %c0_i32_0 : i32, i32
  }
  func.func @transform_3(%arg0: i32) -> (i32, i32) {
    %c0_i32 = arith.constant 0 : i32
    %c0_i32_0 = arith.constant 0 : i32
    return %arg0, %c0_i32 : i32, i32
  }
  func.func @transform_4(%arg0: i32) -> (i32, i32) {
    %c0_i32 = arith.constant 0 : i32
    %c0_i32_0 = arith.constant 0 : i32
    %c0_i32_1 = arith.constant 0 : i32
    return %c0_i32, %c0_i32_0 : i32, i32
  }
  func.func @transform_5(%arg0: i32) -> (i32, i32) {
    %c0_i32 = arith.constant 0 : i32
    %c0_i32_0 = arith.constant 0 : i32
    %c0_i32_1 = arith.constant 0 : i32
    return %c0_i32, %c0_i32_0 : i32, i32
  }
  func.func @transform_6(%arg0: i32) -> (i32, i32) {
    %c0_i32 = arith.constant 0 : i32
    %c0_i32_0 = arith.constant 0 : i32
    %c0_i32_1 = arith.constant 0 : i32
    return %c0_i32, %c0_i32_0 : i32, i32
  }
  func.func @transform_7(%arg0: i32) -> (i32, i32) {
    %c0_i32 = arith.constant 0 : i32
    %c0_i32_0 = arith.constant 0 : i32
    %c0_i32_1 = arith.constant 0 : i32
    return %c0_i32, %c0_i32_0 : i32, i32
  }
  func.func @transform_8(%arg0: i32) -> (i32, i32) {
    %c0_i32 = arith.constant 0 : i32
    %c0_i32_0 = arith.constant 0 : i32
    return %arg0, %c0_i32 : i32, i32
  }
}

module attributes {stable_mosaic.version = 11 : i64} {
  func.func @_final_kernel(%arg0: memref<16x64xf32, #tpu.memory_space<vmem>>, %arg1: memref<1x64xf32, #tpu.memory_space<vmem>>, %arg2: memref<1x64xf32, #tpu.memory_space<vmem>>, %arg3: memref<64x32xbf16, #tpu.memory_space<vmem>>, %arg4: memref<1x32xf32, #tpu.memory_space<vmem>>, %arg5: memref<16x32xf32, #tpu.memory_space<vmem>>) attributes {dimension_semantics = [], scalar_prefetch = 0 : i64, scratch_operands = 0 : i64, tpu.core_type = #tpu.core_type<tc>} {
    %c0 = arith.constant 0 : index
    %c0_0 = arith.constant 0 : index
    %0 = vector.load %arg0[%c0, %c0_0] : memref<16x64xf32, #tpu.memory_space<vmem>>, vector<16x64xf32>
    %c0_1 = arith.constant 0 : index
    %c0_2 = arith.constant 0 : index
    %1 = vector.load %arg1[%c0_1, %c0_2] : memref<1x64xf32, #tpu.memory_space<vmem>>, vector<1x64xf32>
    %c0_3 = arith.constant 0 : index
    %c0_4 = arith.constant 0 : index
    %2 = vector.load %arg2[%c0_3, %c0_4] : memref<1x64xf32, #tpu.memory_space<vmem>>, vector<1x64xf32>
    %cst = arith.constant dense<0.000000e+00> : vector<64xf32>
    %3 = vector.multi_reduction <add>, %0, %cst [0] : vector<16x64xf32> to vector<64xf32>
    %4 = vector.shape_cast %3 : vector<64xf32> to vector<1x64xf32>
    %cst_5 = arith.constant 1.600000e+01 : f32
    %5 = vector.broadcast %cst_5 : f32 to vector<1x64xf32>
    %6 = arith.divf %4, %5 : vector<1x64xf32>
    %7 = vector.broadcast %6 : vector<1x64xf32> to vector<16x64xf32>
    %8 = arith.subf %0, %7 : vector<16x64xf32>
    %9 = arith.mulf %8, %8 : vector<16x64xf32>
    %cst_6 = arith.constant dense<0.000000e+00> : vector<64xf32>
    %10 = vector.multi_reduction <add>, %9, %cst_6 [0] : vector<16x64xf32> to vector<64xf32>
    %11 = vector.shape_cast %10 : vector<64xf32> to vector<1x64xf32>
    %cst_7 = arith.constant 1.600000e+01 : f32
    %12 = vector.broadcast %cst_7 : f32 to vector<1x64xf32>
    %13 = arith.divf %11, %12 : vector<1x64xf32>
    %14 = vector.broadcast %6 : vector<1x64xf32> to vector<16x64xf32>
    %15 = arith.subf %0, %14 : vector<16x64xf32>
    %cst_8 = arith.constant 9.99999974E-6 : f32
    %16 = vector.broadcast %cst_8 : f32 to vector<1x64xf32>
    %17 = arith.addf %13, %16 : vector<1x64xf32>
    %18 = math.rsqrt %17 : vector<1x64xf32>
    %19 = vector.broadcast %18 : vector<1x64xf32> to vector<16x64xf32>
    %20 = arith.mulf %15, %19 : vector<16x64xf32>
    %21 = vector.broadcast %1 : vector<1x64xf32> to vector<16x64xf32>
    %22 = arith.mulf %20, %21 : vector<16x64xf32>
    %23 = vector.broadcast %2 : vector<1x64xf32> to vector<16x64xf32>
    %24 = arith.addf %22, %23 : vector<16x64xf32>
    %cst_9 = arith.constant 0.000000e+00 : f32
    %25 = vector.broadcast %cst_9 : f32 to vector<16x64xf32>
    %26 = arith.maximumf %24, %25 : vector<16x64xf32>
    %27 = arith.truncf %26 : vector<16x64xf32> to vector<16x64xbf16>
    %c0_10 = arith.constant 0 : index
    %c0_11 = arith.constant 0 : index
    %28 = vector.load %arg3[%c0_10, %c0_11] : memref<64x32xbf16, #tpu.memory_space<vmem>>, vector<64x32xbf16>
    %cst_12 = arith.constant dense<0.000000e+00> : vector<16x32xf32>
    %29 = tpu.matmul %27, %28, %cst_12 {dimension_numbers = #tpu.dot_dimension_numbers<[1], [0], [0], [1], [0, 0, 1, 1], [], []>} : vector<16x64xbf16>, vector<64x32xbf16>, vector<16x32xf32> -> vector<16x32xf32>
    %c0_13 = arith.constant 0 : index
    %c0_14 = arith.constant 0 : index
    %30 = vector.load %arg4[%c0_13, %c0_14] : memref<1x32xf32, #tpu.memory_space<vmem>>, vector<1x32xf32>
    %31 = vector.broadcast %30 : vector<1x32xf32> to vector<16x32xf32>
    %32 = arith.addf %29, %31 : vector<16x32xf32>
    %cst_15 = arith.constant 0.000000e+00 : f32
    %33 = vector.broadcast %cst_15 : f32 to vector<16x32xf32>
    %34 = arith.maximumf %32, %33 : vector<16x32xf32>
    %c0_16 = arith.constant 0 : index
    %c0_17 = arith.constant 0 : index
    %35 = vector.load %arg5[%c0_16, %c0_17] : memref<16x32xf32, #tpu.memory_space<vmem>>, vector<16x32xf32>
    tpu.vector_store %arg5[%c0_16, %c0_17], %34 {strides = array<i32>} : memref<16x32xf32, #tpu.memory_space<vmem>>, vector<16x32xf32>,
    return
  }
}

</mosaic_0001>

<bundles_post_ra>
// kernel: _locmotionapp_forward_impl.8
= control target key start
LH: loop header
LB: loop body
LE: loop exit
PB: predicated region body
PF: predicated region fallthrough
CT: control target
= control target key end

     0   :  { %s426_s9 = smov 0   ;;  %s428_s10 = smov 0   ;;  %s464_s0 = inlined_call_operand.vmem [shape: s32[2,1,256], index: 0, kind: input, shape index: {}]   ;;  %s465_s1 = inlined_call_operand.vmem [shape: bf16[2,8,256], index: 1, kind: output, shape index: {0}]   ;;  %s466_s2 = inlined_call_operand.vmem [shape: f32[2,8,1], index: 2, kind: output, shape index: {1}]  }
   0x1   :  { %s430_s11 = smov 0  }
   0x2 LB: > { %s25_s12 = sadd.s32 1, %s404_s10  ;;  %p349_p0 = scmp.ge.s32.totalorder %s408_s11, 1  ;;  %s408_s11 = sphi %s430_s11, %s13_s11   ;;  %s404_s10 = sphi %s428_s10, %s468_s10   ;;  %s400_s9 = sphi %s426_s9, %s467_s9  }
   0x3   : > { %p27_p1 = scmp.ge.s32.totalorder %s25_s12, 2  ;;  %p135_p2 = scmp.lt.s32.totalorder %s408_s11, 3 }
   0x5   : > { %s470_s12 = smov (%p27_p1, %s25_s12), 0  ;;  %p136_p3 = pnand %p349_p0, %p135_p2 }
   0x6   : > { %p169_p4 = scmp.lt.s32.totalorder (!%p136_p3), %s400_s9, 1 }
   0x7   : > { %139 = sbr.rel (%p136_p3) target bundleno = 165 (0xa5), region = 24 }
   0xc   : > { %v192_v0 = vlaneseq  ;;  %s472_s9 = smov (!%p169_p4, %s400_s9), 1  ;;  %vm221_vm0 = vcmask 7168   ;;  %v410_v7 = vmov 0.0  }
   0xd   : > { %s350_s13 = sshll.u32 %s472_s9, 1  ;;  %s359_s14 = sshll.u32 %s472_s9, 3 }
   0xe   : > { %v193_v1 = vshrl.u32 %v192_v0, 7  ;;  %s175_s17 = scalar_lea.vmem %s464_s0, %s350_s13  ;;  %s190_s20 = scalar_lea.vmem %s466_s2, %s359_s14 }
   0xf   : > { %v191_v4 = vld [vmem:[%s175_s17] sm:$0x3]  ;;  %222 = vst.msk [vmem:[%s190_s20] sm:$0xff] %vm221_vm0, %v410_v7  ;;  %s185_s23 = scalar_lea.vmem %s465_s1, %s359_s14 }
  0x10   : > { %v196_v2 = vsub.s32 0, %v193_v1  ;;  %v200_v3 = vsub.s32 1, %v193_v1 }
  0x12   : > { %v197_v5 = vrot.slane %v191_v4, %v196_v2  ;;  %v201_v6 = vrot.slane %v191_v4, %v200_v3 }
  0x14   : > { %vm202_vm1 = vcmp.eq.s32.totalorder %v193_v1, %v197_v5  ;;  %vm203_vm2 = vcmp.eq.s32.totalorder %v193_v1, %v201_v6 }
  0x15   : > { %v354_v8 = vsel %vm202_vm1, 1.0, %v410_v7  ;;  %v355_v9 = vsel %vm203_vm2, 1.0, %v410_v7 }
  0x16   : > { %v360_v10 = vpack.c.bf16 %v355_v9, %v354_v8  ;;  %v224_v11 = vadd.f32 %v355_v9, %v354_v8  ;;  %v223_v12 = vld [vmem:[%s190_s20] sm:$0xff] }
  0x18   : > { %216 = vst [vmem:[%s185_s23] sm:$0xff] %v360_v10  ;;  %225 = vadd.xlane.f32.xlu0 %v224_v11 }
  0xa1   : > { %v226_v13 = vpop.xlane.xlu0 %225 }
  0xa2   : > { %v227_v14 = vadd.f32 %v226_v13, %v223_v12 }
  0xa4   : > { %229 = vst.msk [vmem:[%s190_s20] sm:$0xff] %vm221_vm0, %v227_v14 }
  0xa5 PF: > { %s13_s11 = sadd.s32 1, %s408_s11   ;;  %s467_s9 = smov %s404_s10 }
  0xa6   : > { %p10_p5 = scmp.ge.s32.totalorder %s13_s11, 4   ;;  %s468_s10 = smov %s470_s12 }
  0xa8   :  { %12 = sbr.rel (!%p10_p5) target bundleno = 2 (0x2), region = 70 }

// kernel: _locmotionapp_forward_impl.9
= control target key start
LH: loop header
LB: loop body
LE: loop exit
PB: predicated region body
PF: predicated region fallthrough
CT: control target
= control target key end

     0   :  { %s522_s12 = smov 0   ;;  %s524_s13 = smov 0   ;;  %s564_s0 = inlined_call_operand.vmem [shape: bf16[2,8,256], index: 0, kind: input, shape index: {}]   ;;  %s565_s1 = inlined_call_operand.vmem [shape: f32[2,8,1], index: 1, kind: input, shape index: {}]   ;;  %s566_s2 = inlined_call_operand.vmem [shape: f32[2,4,256], index: 2, kind: input, shape index: {}]   ;;  %s567_s3 = inlined_call_operand.vmem [shape: f32[2,8,4], index: 3, kind: output, shape index: {}]  }
   0x1   :  { %s526_s14 = smov 0  }
   0x2 LB: > { %s25_s15 = sadd.s32 1, %s494_s13  ;;  %p431_p0 = scmp.ge.s32.totalorder %s498_s14, 1  ;;  %s498_s14 = sphi %s526_s14, %s13_s14   ;;  %s494_s13 = sphi %s524_s13, %s569_s13   ;;  %s490_s12 = sphi %s522_s12, %s568_s12  }
   0x3   : > { %p27_p1 = scmp.ge.s32.totalorder %s25_s15, 2  ;;  %p182_p2 = scmp.lt.s32.totalorder %s498_s14, 3 }
   0x5   : > { %s571_s15 = smov (%p27_p1, %s25_s15), 0  ;;  %p183_p3 = pnand %p431_p0, %p182_p2 }
   0x6   : > { %p223_p4 = scmp.lt.s32.totalorder (!%p183_p3), %s490_s12, 1 }
   0x7   : > { %186 = sbr.rel (%p183_p3) target bundleno = 234 (0xea), region = 32 }
   0xc   : > { %v500_v0 = vmov 0   ;;  %s573_s12 = smov (!%p223_p4, %s490_s12), 1  ;;  %vm255_vm0 = vcmask 31744   ;;  %v501_v6 = vmov 0.0  }
   0xd   : > { %470 = vset.pattern.permute.xlu0 %v500_v0  ;;  %s442_s16 = sshll.u32 %s573_s12, 3 }
   0xe   : > { %s235_s19 = scalar_lea.vmem %s565_s1, %s442_s16  ;;  %s244_s22 = scalar_lea.vmem %s566_s2, %s442_s16 }
   0xf   : > { %v258_v1 = vld [vmem:[%s244_s22] sm:$0xff]  ;;  %s230_s25 = scalar_lea.vmem %s564_s0, %s442_s16  ;;  %s249_s28 = scalar_lea.vmem %s567_s3, %s442_s16 }
  0x10   : > { %v318_v2 = vld [vmem:[%s235_s19] sm:$0xff]  ;;  %v260_v3 = vcombine.high %v258_v1, %v258_v1  ;;  %256 = vst.msk [vmem:[%s249_s28] sm:$0xff] %vm255_vm0, %v501_v6  ;;  %v262_v7 = vpack.c.bf16 %v258_v1, %v258_v1 }
  0x11   : > { %v319_v4 = vmax.f32 %v318_v2, 1.0  ;;  %v257_v5 = vld [vmem:[%s230_s25] sm:$0xff] }
  0x12   : > { %v439_v8 = vcombine.high %v257_v5, %v257_v5  ;;  %v263_v9 = vpack.c.bf16 %v260_v3, %v260_v3  ;;  %v438_v10 = vcombine.low %v257_v5, %v257_v5 }
  0x13   : > { %474 = vrcp.f32 %v319_v4 }
  0x14   : > { %304 = vmatprep.mubr.bf16.mxu0 %v439_v8  ;;  %286 = vmatprep.subr.bf16.mxu0 %v263_v9 }
  0x15   : > { %287 = vmatpush1.bf16.xpose.msra.mxu0 %v262_v7 }
  0x17   : > { %v264_v12 = vld [vmem:[%s249_s28] sm:$0xff] }
  0x1c   : > { %305 = vmatmul.mubr.bf16.vlgmr.msra.gmra.mxu0 %v438_v10 }
  0x20   : > { %v475_v11 = vpop.eup %474 }
  0x21   : > { %325 = vperm.xlu0 %470, %v475_v11  }
  0x9c   : > { %v326_v18 = vpop.permute.xlu0 %325 }
  0xdc   : > { %v306_v13 = vpop.f32.mrf.mxu0 }
  0xdd   : > { %v312_v14 = vadd.f32 %v306_v13, %v264_v12 }
  0xde   : > { %v308_v15 = vpop.f32.mrf.mxu0 }
  0xdf   : > { %314 = vst.msk [vmem:[%s249_s28] sm:$0xff] %vm255_vm0, %v312_v14 }
  0xe0   : > { %v309_v16 = vpop.f32.mrf.mxu0 }
  0xe2   : > { %v310_v17 = vpop.f32.mrf.mxu0 }
  0xe6   : > { %v322_v19 = vld [vmem:[%s249_s28] sm:$0xff] }
  0xe7   : > { %v328_v20 = vmul.f32 %v326_v18, %v322_v19 }
  0xe9   : > { %329 = vst.msk [vmem:[%s249_s28] sm:$0xff] %vm255_vm0, %v328_v20 }
  0xea PF: > { %s13_s14 = sadd.s32 1, %s498_s14   ;;  %s568_s12 = smov %s494_s13 }
  0xeb   : > { %p10_p5 = scmp.ge.s32.totalorder %s13_s14, 4   ;;  %s569_s13 = smov %s571_s15 }
  0xed   :  { %12 = sbr.rel (!%p10_p5) target bundleno = 2 (0x2), region = 76 }

// kernel: _locmotionapp_forward_impl.11
= control target key start
LH: loop header
LB: loop body
LE: loop exit
PB: predicated region body
PF: predicated region fallthrough
CT: control target
= control target key end

     0   :  { %v273_v0 = vmov 0.0   ;;  %vm274_vm0 = vmmov 0   ;;  %vm150_vm1 = vcmask 1041408   ;;  %vm33_vm2 = vcmask 31744   ;;  %s276_s21 = smov 96   ;;  %s372_s5 = inlined_call_operand.vmem [shape: bf16[32,64], index: 5, kind: input, shape index: {}]   ;;  %s373_s1 = inlined_call_operand.vmem [shape: f32[16,32], index: 1, kind: input, shape index: {}]   ;;  %s374_s4 = inlined_call_operand.vmem [shape: bf16[4,64], index: 4, kind: input, shape index: {}]   ;;  %s375_s0 = inlined_call_operand.vmem [shape: f32[16,4], index: 0, kind: input, shape index: {}]   ;;  %s376_s6 = inlined_call_operand.vmem [shape: f32[1,32], index: 6, kind: input, shape index: {}]   ;;  %s377_s2 = inlined_call_operand.vmem [shape: f32[1,4], index: 2, kind: input, shape index: {}]   ;;  %s378_s3 = inlined_call_operand.vmem [shape: f32[1,4], index: 3, kind: input, shape index: {}]   ;;  %s379_s7 = inlined_call_operand.vmem [shape: bf16[16,32], index: 7, kind: output, shape index: {0}]   ;;  %s380_s8 = inlined_call_operand.vmem [shape: f32[16,32], index: 8, kind: output, shape index: {1}]  }
   0x1   :  { %251 = vmatprep.subr.bf16.mxu0 %v273_v0  ;;  %v269_v1 = vld [vmem:[%s372_s5 + $0x8] sm:$0xff]   ;;  %255 = vmatprep.mubr.msk.bf16.mxu0 %vm274_vm0, %v273_v0  ;;  %v270_v2 = vld [vmem:[%s372_s5] sm:$0xff]   ;;  %vm102_vm3 = vcmask 261120   ;;  %vm203_vm4 = vcmask 257024  }
   0x2   :  { %259 = vmatprep.subr.bf16.mxu1 %v273_v0  ;;  %261 = vmatprep.mubr.msk.bf16.mxu1 %vm274_vm0, %v273_v0  ;;  %v82_v3 = vld [vmem:[%s373_s1] sm:$0xff]  ;;  %v83_v4 = vld [vmem:[%s373_s1 + $0x8] sm:$0xff] }
   0x3   :  { %252 = vmatpush3.bf16.msra.mxu0 %v269_v1  ;;  %v85_v5 = vld [vmem:[%s374_s4] sm:$0x3]  ;;  %v30_v8 = vld [vmem:[%s375_s0 + $0x8] sm:$0xff]  ;;  %v84_v12 = vpack.c.bf16 %v83_v4, %v82_v3  ;;  %s275_s4 = smov 32  }
   0x4   :  { %253 = vmatprep.subr.bf16.mxu0 %v273_v0  ;;  %v152_v6 = vsel %vm150_vm1, %v85_v5, 0  ;;  %v29_v7 = vld [vmem:[%s375_s0] sm:$0xff]  ;;  %v35_v10 = vsel %vm33_vm2, %v30_v8, 0.0 }
   0x5   :  { %260 = vmatpush3.bf16.msra.mxu1 %v152_v6  ;;  %v34_v9 = vsel %vm33_vm2, %v29_v7, 0.0  ;;  %v243_v11 = vld [vmem:[%s376_s6] ss:$0 sm:$0xff] }
   0x6   :  { %v36_v13 = vadd.f32 %v35_v10, %v34_v9  ;;  %212 = vrot.lane.b32.xlu0 %v243_v11, %s275_s4  ;;  %v235_v37 = vld [vmem:[%s377_s2] ss:$0 sm:$0xff] }
   0x7   :  { %254 = vmatpush3.bf16.msra.mxu0 %v270_v2  ;;  %v236_v40 = vld [vmem:[%s378_s3] ss:$0 sm:$0xff] }
   0x8   :  { %v37_v14 = vrot.slane %v36_v13, 4 }
   0xa   :  { %256 = vmatmul.mubr.msk.bf16.vlgmr.msra.gmra.mxu0 %vm102_vm3, %v84_v12  ;;  %v38_v15 = vadd.f32 %v37_v14, %v36_v13 }
   0xc   :  { %v39_v16 = vrot.slane %v38_v15, 2 }
   0xe   :  { %v40_v17 = vadd.f32 %v39_v16, %v38_v15 }
  0x10   :  { %v41_v18 = vrot.slane %v40_v17, 1 }
  0x12   :  { %v42_v19 = vadd.f32 %v41_v18, %v40_v17 }
  0x14   :  { %v44_v20 = vmul.f32 0.0625, %v42_v19 }
  0x16   :  { %v45_v21 = vsub.f32 %v29_v7, %v44_v20  ;;  %v46_v22 = vsub.f32 %v30_v8, %v44_v20 }
  0x18   :  { %v47_v23 = vmul.f32 %v45_v21, %v45_v21  ;;  %v48_v24 = vmul.f32 %v46_v22, %v46_v22 }
  0x1a   :  { %v49_v25 = vsel %vm33_vm2, %v47_v23, 0.0  ;;  %v50_v26 = vsel %vm33_vm2, %v48_v24, 0.0 }
  0x1b   :  { %v51_v27 = vadd.f32 %v50_v26, %v49_v25 }
  0x1d   :  { %v52_v28 = vrot.slane %v51_v27, 4 }
  0x1f   :  { %v53_v29 = vadd.f32 %v52_v28, %v51_v27 }
  0x21   :  { %v54_v30 = vrot.slane %v53_v29, 2 }
  0x23   :  { %v55_v31 = vadd.f32 %v54_v30, %v53_v29 }
  0x25   :  { %v56_v32 = vrot.slane %v55_v31, 1 }
  0x27   :  { %v57_v33 = vadd.f32 %v56_v32, %v55_v31 }
  0x29   :  { %v58_v34 = vmul.f32 0.0625, %v57_v33 }
  0x2b   :  { %v59_v35 = vadd.f32 1e-05, %v58_v34 }
  0x2d   :  { %271 = vrsqrt.f32 %v59_v35 }
  0x3a   :  { %v272_v36 = vpop.eup %271 }
  0x3b   :  { %v61_v38 = vmul.f32 %v272_v36, %v45_v21  ;;  %v62_v39 = vmul.f32 %v272_v36, %v46_v22 }
  0x3d   :  { %v69_v41 = vmul.f32 %v235_v37, %v61_v38  ;;  %v70_v42 = vmul.f32 %v235_v37, %v62_v39 }
  0x3f   :  { %v77_v43 = vadd.f32 %v236_v40, %v69_v41  ;;  %v78_v44 = vadd.f32 %v236_v40, %v70_v42 }
  0x41   :  { %v79_v45 = vmax.f32 %v77_v43, 0.0  ;;  %v80_v46 = vmax.f32 %v78_v44, 0.0 }
  0x43   :  { %v81_v47 = vpack.c.bf16 %v80_v46, %v79_v45 }
  0x45   :  { %262 = vmatmul.mubr.msk.bf16.vlgmr.msra.gmra.mxu1 %vm33_vm2, %v81_v47 }
  0x78   :  { %v213_v53 = vpop.permute.xlu0 %212 }
  0xca   :  { %v140_v48 = vpop.f32.mrf.mxu0 }
  0xcc   :  { %v257_v49 = vpop.f32.mrf.mxu0 }
  0xce   :  { %v143_v50 = vpop.f32.mrf.mxu0 }
  0xd0   :  { %v258_v51 = vpop.f32.mrf.mxu0 }
 0x105   :  { %v188_v52 = vpop.f32.mrf.mxu1 }
 0x106   :  { %v189_v54 = vadd.f32 %v188_v52, %v140_v48 }
 0x107   :  { %v263_v55 = vpop.f32.mrf.mxu1 }
 0x108   :  { %v244_v56 = vpack.c.bf16 %v189_v54, %v189_v54  ;;  %v215_v57 = vadd.f32 %v213_v53, %v189_v54 }
 0x109   :  { %v191_v58 = vpop.f32.mrf.mxu1 }
 0x10a   :  { %204 = vst.msk [vmem:[%s379_s7] sm:$0xf] %vm203_vm4, %v244_v56  ;;  %v192_v59 = vadd.f32 %v191_v58, %v143_v50  ;;  %219 = vrot.lane.b32.xlu0 %v215_v57, %s276_s21 }
 0x10b   :  { %v264_v60 = vpop.f32.mrf.mxu1 }
 0x10c   :  { %v245_v61 = vpack.c.bf16 %v192_v59, %v192_v59  ;;  %v216_v62 = vadd.f32 %v213_v53, %v192_v59 }
 0x10e   :  { %205 = vst.msk [vmem:[%s379_s7 + $0x4] sm:$0xf] %vm203_vm4, %v245_v61  ;;  %221 = vrot.lane.b32.xlu1 %v216_v62, %s276_s21 }
 0x17c   :  { %v220_v63 = vpop.permute.xlu0 %219 }
 0x17d   :  { %225 = vst.msk [vmem:[%s380_s8] sm:$0xff] %vm102_vm3, %v220_v63 }
 0x180   :  { %v222_v0 = vpop.permute.xlu1 %221 }
 0x181   :  { %226 = vst.msk [vmem:[%s380_s8 + $0x8] sm:$0xff] %vm102_vm3, %v222_v0 }

// kernel: _locmotionapp_forward_impl.13
= control target key start
LH: loop header
LB: loop body
LE: loop exit
PB: predicated region body
PF: predicated region fallthrough
CT: control target
= control target key end

     0   :  { %v316_v0 = vmov 0.0   ;;  %vm317_vm0 = vmmov 0   ;;  %vm37_vm1 = vcmask 261120   ;;  %vm101_vm2 = vcmask 130048   ;;  %s419_s5 = inlined_call_operand.vmem [shape: bf16[16,32], index: 5, kind: input, shape index: {}]   ;;  %s420_s4 = inlined_call_operand.vmem [shape: bf16[32,32], index: 4, kind: input, shape index: {}]   ;;  %s421_s1 = inlined_call_operand.vmem [shape: f32[16,16], index: 1, kind: input, shape index: {}]   ;;  %s422_s0 = inlined_call_operand.vmem [shape: f32[16,32], index: 0, kind: input, shape index: {}]   ;;  %s423_s2 = inlined_call_operand.vmem [shape: f32[1,32], index: 2, kind: input, shape index: {}]   ;;  %s424_s3 = inlined_call_operand.vmem [shape: f32[1,32], index: 3, kind: input, shape index: {}]   ;;  %s425_s6 = inlined_call_operand.vmem [shape: f32[1,32], index: 6, kind: input, shape index: {}]   ;;  %s426_s7 = inlined_call_operand.vmem [shape: f32[1,32], index: 7, kind: input, shape index: {}]   ;;  %s427_s8 = inlined_call_operand.vmem [shape: f32[1,32], index: 8, kind: input, shape index: {}]   ;;  %s428_s9 = inlined_call_operand.vmem [shape: bf16[16,32], index: 9, kind: output, shape index: {}]  }
   0x1   :  { %293 = vmatprep.subr.bf16.mxu0 %v316_v0  ;;  %v309_v1 = vld [vmem:[%s419_s5] sm:$0xff]   ;;  %299 = vmatprep.subr.bf16.mxu1 %v316_v0  ;;  %v310_v2 = vld [vmem:[%s420_s4 + $0x8] sm:$0xff]   ;;  %vm267_vm3 = vcmask 257024  }
   0x2   :  { %295 = vmatprep.mubr.msk.bf16.mxu0 %vm317_vm0, %v316_v0  ;;  %303 = vmatprep.mubr.msk.bf16.mxu1 %vm317_vm0, %v316_v0  ;;  %v86_v3 = vld [vmem:[%s421_s1] sm:$0xff]  ;;  %v87_v4 = vld [vmem:[%s421_s1 + $0x8] sm:$0xff] }
   0x3   :  { %294 = vmatpush3.bf16.msra.mxu0 %v309_v1  ;;  %300 = vmatpush3.bf16.msra.mxu1 %v310_v2  ;;  %v88_v5 = vpack.c.bf16 %v87_v4, %v86_v3  ;;  %v311_v6 = vld [vmem:[%s420_s4] sm:$0xff]   ;;  %v34_v8 = vld [vmem:[%s422_s0 + $0x8] sm:$0xff] }
   0x4   :  { %v33_v7 = vld [vmem:[%s422_s0] sm:$0xff]  ;;  %301 = vmatprep.subr.bf16.mxu1 %v316_v0  ;;  %v39_v10 = vsel %vm37_vm1, %v34_v8, 0.0 }
   0x5   :  { %v38_v9 = vsel %vm37_vm1, %v33_v7, 0.0  ;;  %v274_v35 = vld [vmem:[%s423_s2] ss:$0 sm:$0xff] }
   0x6   :  { %296 = vmatmul.mubr.msk.bf16.vlgmr.msra.gmra.mxu0 %vm101_vm2, %v88_v5  ;;  %v40_v11 = vadd.f32 %v39_v10, %v38_v9  ;;  %v275_v38 = vld [vmem:[%s424_s3] ss:$0 sm:$0xff] }
   0x7   :  { %302 = vmatpush3.bf16.msra.mxu1 %v311_v6  ;;  %v281_v52 = vld [vmem:[%s425_s6] ss:$0 sm:$0xff] }
   0x8   :  { %v41_v12 = vrot.slane %v40_v11, 4 }
   0xa   :  { %v42_v13 = vadd.f32 %v41_v12, %v40_v11 }
   0xc   :  { %v43_v14 = vrot.slane %v42_v13, 2 }
   0xe   :  { %v44_v15 = vadd.f32 %v43_v14, %v42_v13 }
  0x10   :  { %v45_v16 = vrot.slane %v44_v15, 1 }
  0x12   :  { %v46_v17 = vadd.f32 %v45_v16, %v44_v15 }
  0x14   :  { %v48_v18 = vmul.f32 0.0625, %v46_v17 }
  0x16   :  { %v49_v19 = vsub.f32 %v33_v7, %v48_v18  ;;  %v50_v20 = vsub.f32 %v34_v8, %v48_v18 }
  0x18   :  { %v51_v21 = vmul.f32 %v49_v19, %v49_v19  ;;  %v52_v22 = vmul.f32 %v50_v20, %v50_v20 }
  0x1a   :  { %v53_v23 = vsel %vm37_vm1, %v51_v21, 0.0  ;;  %v54_v24 = vsel %vm37_vm1, %v52_v22, 0.0  ;;  %v282_v21 = vld [vmem:[%s426_s7] ss:$0 sm:$0xff] }
  0x1b   :  { %v55_v25 = vadd.f32 %v54_v24, %v53_v23  ;;  %v283_v24 = vld [vmem:[%s427_s8] ss:$0 sm:$0xff] }
  0x1d   :  { %v56_v26 = vrot.slane %v55_v25, 4 }
  0x1f   :  { %v57_v27 = vadd.f32 %v56_v26, %v55_v25 }
  0x21   :  { %v58_v28 = vrot.slane %v57_v27, 2 }
  0x23   :  { %v59_v29 = vadd.f32 %v58_v28, %v57_v27 }
  0x25   :  { %v60_v30 = vrot.slane %v59_v29, 1 }
  0x27   :  { %v61_v31 = vadd.f32 %v60_v30, %v59_v29 }
  0x29   :  { %v62_v32 = vmul.f32 0.0625, %v61_v31 }
  0x2b   :  { %v63_v33 = vadd.f32 1e-05, %v62_v32 }
  0x2d   :  { %312 = vrsqrt.f32 %v63_v33 }
  0x3a   :  { %v313_v34 = vpop.eup %312 }
  0x3b   :  { %v65_v36 = vmul.f32 %v313_v34, %v49_v19  ;;  %v66_v37 = vmul.f32 %v313_v34, %v50_v20 }
  0x3d   :  { %v73_v39 = vmul.f32 %v274_v35, %v65_v36  ;;  %v74_v40 = vmul.f32 %v274_v35, %v66_v37 }
  0x3f   :  { %v81_v41 = vadd.f32 %v275_v38, %v73_v39  ;;  %v82_v42 = vadd.f32 %v275_v38, %v74_v40 }
  0x41   :  { %v83_v43 = vmax.f32 %v81_v41, 0.0  ;;  %v84_v44 = vmax.f32 %v82_v42, 0.0 }
  0x43   :  { %v85_v45 = vpack.c.bf16 %v84_v44, %v83_v43 }
  0x45   :  { %304 = vmatmul.mubr.msk.bf16.vlgmr.msra.gmra.mxu1 %vm37_vm1, %v85_v45 }
  0xc6   :  { %v139_v46 = vpop.f32.mrf.mxu0 }
  0xc8   :  { %v297_v47 = vpop.f32.mrf.mxu0 }
  0xca   :  { %v142_v48 = vpop.f32.mrf.mxu0 }
  0xcc   :  { %v298_v49 = vpop.f32.mrf.mxu0 }
 0x105   :  { %v195_v50 = vpop.f32.mrf.mxu1 }
 0x106   :  { %v196_v51 = vadd.f32 %v195_v50, %v139_v46 }
 0x107   :  { %v305_v53 = vpop.f32.mrf.mxu1 }
 0x108   :  { %v209_v55 = vadd.f32 %v281_v52, %v196_v51 }
 0x109   :  { %v198_v54 = vpop.f32.mrf.mxu1 }
 0x10a   :  { %v199_v56 = vadd.f32 %v198_v54, %v142_v48  ;;  %v213_v59 = vsel %vm37_vm1, %v209_v55, 0.0 }
 0x10b   :  { %v306_v57 = vpop.f32.mrf.mxu1 }
 0x10c   :  { %v210_v58 = vadd.f32 %v281_v52, %v199_v56 }
 0x10e   :  { %v214_v60 = vsel %vm37_vm1, %v210_v58, 0.0 }
 0x10f   :  { %v215_v61 = vadd.f32 %v214_v60, %v213_v59 }
 0x111   :  { %v216_v62 = vrot.slane %v215_v61, 4 }
 0x113   :  { %v217_v63 = vadd.f32 %v216_v62, %v215_v61 }
 0x115   :  { %v218_v0 = vrot.slane %v217_v63, 2 }
 0x117   :  { %v219_v1 = vadd.f32 %v218_v0, %v217_v63 }
 0x119   :  { %v220_v2 = vrot.slane %v219_v1, 1 }
 0x11b   :  { %v221_v3 = vadd.f32 %v220_v2, %v219_v1 }
 0x11d   :  { %v222_v4 = vmul.f32 0.0625, %v221_v3 }
 0x11f   :  { %v223_v5 = vsub.f32 %v209_v55, %v222_v4  ;;  %v224_v6 = vsub.f32 %v210_v58, %v222_v4 }
 0x121   :  { %v225_v7 = vmul.f32 %v223_v5, %v223_v5  ;;  %v226_v8 = vmul.f32 %v224_v6, %v224_v6 }
 0x123   :  { %v227_v9 = vsel %vm37_vm1, %v225_v7, 0.0  ;;  %v228_v10 = vsel %vm37_vm1, %v226_v8, 0.0 }
 0x124   :  { %v229_v11 = vadd.f32 %v228_v10, %v227_v9 }
 0x126   :  { %v230_v12 = vrot.slane %v229_v11, 4 }
 0x128   :  { %v231_v13 = vadd.f32 %v230_v12, %v229_v11 }
 0x12a   :  { %v232_v14 = vrot.slane %v231_v13, 2 }
 0x12c   :  { %v233_v15 = vadd.f32 %v232_v14, %v231_v13 }
 0x12e   :  { %v234_v16 = vrot.slane %v233_v15, 1 }
 0x130   :  { %v235_v17 = vadd.f32 %v234_v16, %v233_v15 }
 0x132   :  { %v236_v18 = vmul.f32 0.0625, %v235_v17 }
 0x134   :  { %v237_v19 = vadd.f32 1e-05, %v236_v18 }
 0x136   :  { %314 = vrsqrt.f32 %v237_v19 }
 0x143   :  { %v315_v20 = vpop.eup %314 }
 0x144   :  { %v239_v22 = vmul.f32 %v315_v20, %v223_v5  ;;  %v240_v23 = vmul.f32 %v315_v20, %v224_v6 }
 0x146   :  { %v247_v25 = vmul.f32 %v282_v21, %v239_v22  ;;  %v248_v26 = vmul.f32 %v282_v21, %v240_v23 }
 0x148   :  { %v255_v27 = vadd.f32 %v283_v24, %v247_v25  ;;  %v256_v28 = vadd.f32 %v283_v24, %v248_v26 }
 0x14a   :  { %v257_v29 = vmax.f32 %v255_v27, 0.0  ;;  %v258_v30 = vmax.f32 %v256_v28, 0.0 }
 0x14c   :  { %v286_v31 = vpack.c.bf16 %v257_v29, %v257_v29  ;;  %v287_v32 = vpack.c.bf16 %v258_v30, %v258_v30 }
 0x14e   :  { %268 = vst.msk [vmem:[%s428_s9] sm:$0xf] %vm267_vm3, %v286_v31  ;;  %269 = vst.msk [vmem:[%s428_s9 + $0x4] sm:$0xf] %vm267_vm3, %v287_v32 }

// kernel: _locmotionapp_forward_impl.10
= control target key start
LH: loop header
LB: loop body
LE: loop exit
PB: predicated region body
PF: predicated region fallthrough
CT: control target
= control target key end

     0   :  { %s739_s18 = smov 0   ;;  %s741_s19 = smov 0   ;;  %s808_s0 = inlined_call_operand.vmem [shape: bf16[2,8,64], index: 0, kind: input, shape index: {}]   ;;  %s809_s1 = inlined_call_operand.vmem [shape: f32[2,8,1], index: 1, kind: input, shape index: {}]   ;;  %s810_s2 = inlined_call_operand.vmem [shape: f32[2,32,64], index: 2, kind: input, shape index: {}]   ;;  %s811_s3 = inlined_call_operand.vmem [shape: f32[2,16,64], index: 3, kind: input, shape index: {}]   ;;  %s812_s4 = inlined_call_operand.vmem [shape: f32[2,8,32], index: 4, kind: output, shape index: {0}]   ;;  %s813_s5 = inlined_call_operand.vmem [shape: f32[2,8,16], index: 5, kind: output, shape index: {1}]  }
   0x1   :  { %s743_s20 = smov 0  }
   0x2 LB: > { %s28_s21 = sadd.s32 1, %s700_s19  ;;  %p618_p0 = scmp.ge.s32.totalorder %s704_s20, 1  ;;  %s704_s20 = sphi %s743_s20, %s16_s20   ;;  %s700_s19 = sphi %s741_s19, %s815_s19   ;;  %s696_s18 = sphi %s739_s18, %s814_s18  }
   0x3   : > { %p30_p1 = scmp.ge.s32.totalorder %s28_s21, 2  ;;  %p245_p2 = scmp.lt.s32.totalorder %s704_s20, 3 }
   0x5   : > { %s817_s21 = smov (%p30_p1, %s28_s21), 0  ;;  %p246_p3 = pnand %p618_p0, %p245_p2 }
   0x6   : > { %p298_p4 = scmp.lt.s32.totalorder (!%p246_p3), %s696_s18, 1 }
   0x7   : > { %249 = sbr.rel (%p246_p3) target bundleno = 240 (0xf0), region = 36 }
   0xc   : > { %v706_v0 = vmov 0.0   ;;  %s819_s18 = smov (!%p298_p4, %s696_s18), 1  ;;  %vm707_vm0 = vmmov 0   ;;  %v708_v1 = vmov 0   ;;  %vm350_vm1 = vcmask 523264  }
   0xd   : > { %638 = vmatprep.subr.bf16.mxu0 %v706_v0  ;;  %646 = vmatprep.subr.bf16.mxu1 %v706_v0  ;;  %s631_s22 = sshll.u32 %s819_s18, 5  ;;  %s632_s23 = sshll.u32 %s819_s18, 4  ;;  %vm340_vm2 = vcmask 130048   ;;  %vm338_vm3 = vcmask 261120  }
   0xe   : > { %648 = vmatprep.mubr.msk.bf16.mxu1 %vm707_vm0, %v706_v0  ;;  %642 = vmatprep.mubr.msk.bf16.mxu0 %vm707_vm0, %v706_v0  ;;  %s316_s26 = scalar_lea.vmem %s810_s2, %s631_s22  ;;  %s324_s29 = scalar_lea.vmem %s811_s3, %s632_s23 }
   0xf   : > { %679 = vset.pattern.permute.xlu0 %v708_v1  ;;  %v345_v2 = vld [vmem:[%s316_s26 + $0x10] sm:$0xff]  ;;  %v346_v3 = vld [vmem:[%s316_s26 + $0x18] sm:$0xff]  ;;  %v403_v4 = vld [vmem:[%s324_s29] sm:$0xff]  ;;  %s620_s30 = sshll.u32 %s819_s18, 3  ;;  %s619_s12 = sshll.u32 %s819_s18, 2 }
  0x10   : > { %v348_v5 = vpack.c.bf16 %v346_v3, %v345_v2  ;;  %v404_v6 = vld [vmem:[%s324_s29 + $0x8] sm:$0xff]  ;;  %s308_s8 = scalar_lea.vmem %s809_s1, %s620_s30  ;;  %v343_v8 = vld [vmem:[%s316_s26] sm:$0xff]  ;;  %s774_s11 = scalar_lea.vmem %s813_s5, %s620_s30 }
  0x11   : > { %v405_v7 = vpack.c.bf16 %v404_v6, %v403_v4  ;;  %v344_v9 = vld [vmem:[%s316_s26 + $0x8] sm:$0xff]  ;;  %v456_v10 = vld [vmem:[%s308_s8] sm:$0xff]  ;;  %341 = vst.msk [vmem:[%s774_s11] sm:$0xff] %vm340_vm2, %v706_v0  ;;  %s304_s15 = scalar_lea.vmem %s808_s0, %s619_s12  ;;  %s328_s18 = scalar_lea.vmem %s812_s4, %s620_s30 }
  0x12   : > { %v358_v11 = vsel %vm350_vm1, %v348_v5, 0  ;;  %v457_v12 = vmax.f32 %v456_v10, 1.0  ;;  %v347_v14 = vpack.c.bf16 %v344_v9, %v343_v8  ;;  %v342_v16 = vld [vmem:[%s304_s15] sm:$0xf]  ;;  %339 = vst.msk [vmem:[%s328_s18] sm:$0xff] %vm338_vm3, %v706_v0 }
  0x13   : > { %639 = vmatpush3.bf16.xpose.msra.mxu0 %v358_v11  ;;  %v408_v13 = vsel %vm350_vm1, %v405_v7, 0 }
  0x14   : > { %647 = vmatpush3.bf16.xpose.msra.mxu1 %v408_v13  ;;  %640 = vmatprep.subr.bf16.mxu0 %v706_v0  ;;  %680 = vrcp.f32 %v457_v12  ;;  %v355_v15 = vsel %vm350_vm1, %v347_v14, 0 }
  0x18   : > { %v406_v18 = vld [vmem:[%s774_s11] sm:$0xff] }
  0x19   : > { %v349_v23 = vld [vmem:[%s328_s18] sm:$0xff] }
  0x1b   : > { %641 = vmatpush3.bf16.xpose.msra.mxu0 %v355_v15  ;;  %649 = vmatmul.mubr.msk.bf16.vlgmr.msra.gmra.mxu1 %vm350_vm1, %v342_v16 }
  0x21   : > { %v681_v17 = vpop.eup %680 }
  0x22   : > { %643 = vmatmul.mubr.msk.bf16.vlgmr.msra.gmra.mxu0 %vm350_vm1, %v342_v16  ;;  %463 = vperm.xlu0 %679, %v681_v17  }
  0x9d   : > { %v464_v27 = vpop.permute.xlu0 %463 }
  0xdb   : > { %v444_v19 = vpop.f32.mrf.mxu1 }
  0xdc   : > { %v450_v20 = vadd.f32 %v444_v19, %v406_v18 }
  0xdd   : > { %v650_v21 = vpop.f32.mrf.mxu1 }
  0xde   : > { %452 = vst.msk [vmem:[%s774_s11] sm:$0xff] %vm340_vm2, %v450_v20 }
  0xdf   : > { %v447_v22 = vpop.f32.mrf.mxu1 }
  0xe1   : > { %v651_v24 = vpop.f32.mrf.mxu1 }
  0xe2   : > { %v394_v25 = vpop.f32.mrf.mxu0 }
  0xe3   : > { %v400_v26 = vadd.f32 %v394_v25, %v349_v23 }
  0xe4   : > { %v644_v28 = vpop.f32.mrf.mxu0 }
  0xe5   : > { %402 = vst.msk [vmem:[%s328_s18] sm:$0xff] %vm338_vm3, %v400_v26  ;;  %v468_v29 = vld [vmem:[%s774_s11] sm:$0xff] }
  0xe6   : > { %v397_v30 = vpop.f32.mrf.mxu0  ;;  %v469_v31 = vmul.f32 %v468_v29, %v464_v27 }
  0xe8   : > { %v645_v32 = vpop.f32.mrf.mxu0  ;;  %470 = vst.msk [vmem:[%s774_s11] sm:$0xff] %vm340_vm2, %v469_v31 }
  0xec   : > { %v460_v33 = vld [vmem:[%s328_s18] sm:$0xff] }
  0xed   : > { %v466_v34 = vmul.f32 %v464_v27, %v460_v33 }
  0xef   : > { %467 = vst.msk [vmem:[%s328_s18] sm:$0xff] %vm338_vm3, %v466_v34 }
  0xf0 PF: > { %s16_s20 = sadd.s32 1, %s704_s20   ;;  %s814_s18 = smov %s700_s19 }
  0xf1   : > { %p13_p5 = scmp.ge.s32.totalorder %s16_s20, 4   ;;  %s815_s19 = smov %s817_s21 }
  0xf3   :  { %15 = sbr.rel (!%p13_p5) target bundleno = 2 (0x2), region = 95 }

// kernel: _locmotionapp_forward_impl.12
= control target key start
LH: loop header
LB: loop body
LE: loop exit
PB: predicated region body
PF: predicated region fallthrough
CT: control target
= control target key end

     0   :  { %v171_v0 = vmov 0.0   ;;  %vm172_vm0 = vmmov 0   ;;  %vm33_vm1 = vcmask 130048   ;;  %v129_v4 = vlaneseq  ;;  %s219_s2 = inlined_call_operand.vmem [shape: bf16[16,32], index: 2, kind: input, shape index: {}]   ;;  %s220_s0 = inlined_call_operand.vmem [shape: bf16[16,16], index: 0, kind: input, shape index: {}]   ;;  %s221_s1 = inlined_call_operand.vmem [shape: bf16[16,16], index: 1, kind: input, shape index: {}]   ;;  %s222_s3 = inlined_call_operand.vmem [shape: f32[16,32], index: 3, kind: input, shape index: {}]   ;;  %s223_s4 = inlined_call_operand.vmem [shape: f32[16,32], index: 4, kind: output, shape index: {}]  }
   0x1   :  { %154 = vmatprep.subr.bf16.mxu0 %v171_v0  ;;  %160 = vmatprep.subr.bf16.mxu1 %v171_v0  ;;  %v168_v1 = vld [vmem:[%s219_s2] sm:$0xff]   ;;  %vm138_vm3 = vcmask 261120   ;;  %v135_v13 = vld [vmem:[%s222_s3 + $0x8] sm:$0xff] }
   0x2   :  { %156 = vmatprep.mubr.msk.bf16.mxu0 %vm172_vm0, %v171_v0  ;;  %162 = vmatprep.mubr.msk.bf16.mxu1 %vm172_vm0, %v171_v0  ;;  %v169_v2 = vld [vmem:[%s220_s0] sm:$0xff]   ;;  %v130_v5 = vand.u32 127, %v129_v4 }
   0x3   :  { %155 = vmatpush3.bf16.msra.mxu0 %v168_v1  ;;  %161 = vmatpush3.bf16.msra.mxu1 %v168_v1  ;;  %v170_v3 = vld [vmem:[%s221_s1] sm:$0xff]  }
   0x4   :  { %vm131_vm2 = vcmp.lt.s32.totalorder %v130_v5, 16  ;;  %v134_v6 = vld [vmem:[%s222_s3] sm:$0xff] }
   0x6   :  { %157 = vmatmul.mubr.msk.bf16.vlgmr.msra.gmra.mxu0 %vm33_vm1, %v169_v2  ;;  %163 = vmatmul.mubr.msk.bf16.vlgmr.msra.gmra.mxu1 %vm33_vm1, %v170_v3 }
  0xc6   :  { %v71_v7 = vpop.f32.mrf.mxu0  ;;  %v122_v8 = vpop.f32.mrf.mxu1 }
  0xc7   :  { %v132_v9 = vsel %vm131_vm2, %v71_v7, %v122_v8 }
  0xc8   :  { %v136_v10 = vadd.f32 %v134_v6, %v132_v9  ;;  %v158_v11 = vpop.f32.mrf.mxu0  ;;  %v164_v12 = vpop.f32.mrf.mxu1 }
  0xca   :  { %139 = vst.msk [vmem:[%s223_s4] sm:$0xff] %vm138_vm3, %v136_v10  ;;  %v74_v14 = vpop.f32.mrf.mxu0  ;;  %v125_v15 = vpop.f32.mrf.mxu1 }
  0xcb   :  { %v133_v16 = vsel %vm131_vm2, %v74_v14, %v125_v15 }
  0xcc   :  { %v137_v17 = vadd.f32 %v135_v13, %v133_v16  ;;  %v159_v18 = vpop.f32.mrf.mxu0  ;;  %v165_v19 = vpop.f32.mrf.mxu1 }
  0xce   :  { %140 = vst.msk [vmem:[%s223_s4 + $0x8] sm:$0xff] %vm138_vm3, %v137_v17 }

// kernel: _locmotionapp_forward_impl.15
= control target key start
LH: loop header
LB: loop body
LE: loop exit
PB: predicated region body
PF: predicated region fallthrough
CT: control target
= control target key end

     0   :  { %v237_v1 = vmov 0.0   ;;  %vm238_vm0 = vmmov 0   ;;  %vm26_vm1 = vcmask 523264   ;;  %s307_s0 = inlined_call_operand.vmem [shape: f32[16,64], index: 0, kind: input, shape index: {}]   ;;  %s308_s1 = inlined_call_operand.vmem [shape: f32[1,64], index: 1, kind: input, shape index: {}]   ;;  %s309_s2 = inlined_call_operand.vmem [shape: f32[1,64], index: 2, kind: input, shape index: {}]   ;;  %s310_s3 = inlined_call_operand.vmem [shape: bf16[64,32], index: 3, kind: input, shape index: {}]   ;;  %s311_s4 = inlined_call_operand.vmem [shape: f32[1,32], index: 4, kind: input, shape index: {}]   ;;  %s312_s5 = inlined_call_operand.hbm [shape: f32[16,32], index: 5, kind: output, shape index: {}]  }
   0x1   :  { %v209_v0 = vld [vmem:[%s310_s3 + $0x18] sm:$0xff]   ;;  %192 = vmatprep.subr.bf16.mxu0 %v237_v1  ;;  %v210_v2 = vld [vmem:[%s310_s3 + $0x10] sm:$0xff]   ;;  %200 = vmatprep.mubr.msk.bf16.mxu0 %vm238_vm0, %v237_v1  ;;  %v22_v3 = vld [vmem:[%s307_s0] sm:$0xff] }
   0x2   :  { %193 = vmatpush3.bf16.msra.mxu0 %v209_v0  ;;  %v23_v4 = vld [vmem:[%s307_s0 + $0x8] sm:$0xff]  ;;  %v27_v5 = vsel %vm26_vm1, %v22_v3, 0.0 }
   0x3   :  { %194 = vmatprep.subr.bf16.mxu0 %v237_v1  ;;  %v28_v6 = vsel %vm26_vm1, %v23_v4, 0.0  ;;  %v211_v7 = vld [vmem:[%s310_s3 + $0x8] sm:$0xff]  }
   0x4   :  { %v29_v8 = vadd.f32 %v28_v6, %v27_v5 }
   0x6   :  { %195 = vmatpush3.bf16.msra.mxu0 %v210_v2 }
   0x7   :  { %10 = vsyncpa [#allocation3], 0  ;;  %196 = vmatprep.subr.bf16.mxu0 %v237_v1  ;;  %v30_v9 = vrot.slane %v29_v8, 4  ;;  %v212_v10 = vld [vmem:[%s310_s3] sm:$0xff]   ;;  %vm160_vm2 = vcmask 261120  }
   0x8   :  { %v179_v33 = vld [vmem:[%s308_s1] ss:$0 sm:$0xff]  ;;  %s239_s1 = smov [#allocation2]  }
   0x9   :  { %v31_v11 = vadd.f32 %v30_v9, %v29_v8  ;;  %v180_v36 = vld [vmem:[%s309_s2] ss:$0 sm:$0xff]  ;;  %s168_s2 = sshll.u32 %s239_s1, 4  ;;  %s169_s2 = int_to_ptr.vmem [resolvable:$true] %s168_s2 }
   0xa   :  { %197 = vmatpush3.bf16.msra.mxu0 %v211_v7  ;;  %v181_v44 = vld [vmem:[%s311_s4] ss:$0 sm:$0xff]  ;;  %s215_s9 = scalar_lea.vmem %s169_s2, 256  ;;  %p220_p1 = scmp.lt.s32.totalorder %s169_s2, %s169_s2 }
   0xb   :  { %198 = vmatprep.subr.bf16.mxu0 %v237_v1  ;;  %v32_v12 = vrot.slane %v31_v11, 2  ;;  %p216_p0 = scmp.ne.s32.totalorder %s169_s2, %s215_s9  ;;  %p221_p2 = scmp.lt.s32.totalorder %s215_s9, %s215_s9 }
   0xd   :  { %v33_v13 = vadd.f32 %v32_v12, %v31_v11  ;;  %p222_p3 = por %p221_p2, %p220_p1 }
   0xe   :  { %199 = vmatpush3.bf16.msra.mxu0 %v212_v10 }
   0xf   :  { %v34_v14 = vrot.slane %v33_v13, 1  ;;  %p223_p4 = pnand %p222_p3, %p216_p0 }
  0x11   :  { %v35_v15 = vadd.f32 %v34_v14, %v33_v13 }
  0x13   :  { %v37_v16 = vmul.f32 0.0625, %v35_v15 }
  0x15   :  { %v38_v17 = vsub.f32 %v22_v3, %v37_v16  ;;  %v39_v18 = vsub.f32 %v23_v4, %v37_v16 }
  0x17   :  { %v40_v19 = vmul.f32 %v38_v17, %v38_v17  ;;  %v41_v20 = vmul.f32 %v39_v18, %v39_v18 }
  0x19   :  { %v42_v21 = vsel %vm26_vm1, %v40_v19, 0.0  ;;  %v43_v22 = vsel %vm26_vm1, %v41_v20, 0.0 }
  0x1a   :  { %v44_v23 = vadd.f32 %v43_v22, %v42_v21 }
  0x1c   :  { %v45_v24 = vrot.slane %v44_v23, 4 }
  0x1e   :  { %v46_v25 = vadd.f32 %v45_v24, %v44_v23 }
  0x20   :  { %v47_v26 = vrot.slane %v46_v25, 2 }
  0x22   :  { %v48_v27 = vadd.f32 %v47_v26, %v46_v25 }
  0x24   :  { %v49_v28 = vrot.slane %v48_v27, 1 }
  0x26   :  { %v50_v29 = vadd.f32 %v49_v28, %v48_v27 }
  0x28   :  { %v51_v30 = vmul.f32 0.0625, %v50_v29 }
  0x2a   :  { %v52_v31 = vadd.f32 1e-05, %v51_v30 }
  0x2c   :  { %213 = vrsqrt.f32 %v52_v31 }
  0x39   :  { %v214_v32 = vpop.eup %213 }
  0x3a   :  { %v54_v34 = vmul.f32 %v214_v32, %v38_v17  ;;  %v55_v35 = vmul.f32 %v214_v32, %v39_v18 }
  0x3c   :  { %v62_v37 = vmul.f32 %v179_v33, %v54_v34  ;;  %v63_v38 = vmul.f32 %v179_v33, %v55_v35 }
  0x3e   :  { %v70_v39 = vadd.f32 %v180_v36, %v62_v37  ;;  %v71_v40 = vadd.f32 %v180_v36, %v63_v38 }
  0x40   :  { %v72_v41 = vmax.f32 %v70_v39, 0.0  ;;  %v73_v42 = vmax.f32 %v71_v40, 0.0 }
  0x42   :  { %v74_v43 = vpack.c.bf16 %v73_v42, %v72_v41 }
  0x44   :  { %201 = vmatmul.mubr.msk.bf16.vlgmr.msra.gmra.mxu0 %vm26_vm1, %v74_v43 }
 0x104   :  { %v151_v45 = vpop.f32.mrf.mxu0 }
 0x105   :  { %v152_v46 = vadd.f32 %v181_v44, %v151_v45 }
 0x106   :  { %v202_v47 = vpop.f32.mrf.mxu0 }
 0x107   :  { %v158_v48 = vmax.f32 %v152_v46, 0.0 }
 0x108   :  { %v154_v49 = vpop.f32.mrf.mxu0 }
 0x109   :  { %161 = vst.msk [vmem:[#allocation2] sm:$0xff] %vm160_vm2, %v158_v48  ;;  %v155_v50 = vadd.f32 %v181_v44, %v154_v49 }
 0x10a   :  { %v203_v51 = vpop.f32.mrf.mxu0 }
 0x10b   :  { %v159_v52 = vmax.f32 %v155_v50, 0.0 }
 0x10d   :  { %162 = vst.msk [vmem:[#allocation2 + $0x8] sm:$0xff] %vm160_vm2, %v159_v52 }
 0x10e   :  { %226 = shalt.err (!%p223_p4)
}
 0x10f   :  { %s240_s4 = smov 128   ;;  %s241_s10 = smov 8  }
 0x110   :  { %174 = dma.vmem_to_hbm [thread:$0]  %s169_s2, 256, %s312_s5, [#allocation3], %s240_s4, %s240_s4, %s241_s10  }
 0x111   :  { %235 = dma.done.wait [#allocation3], 256  }
 0x112   :  { %236 = vsyncadd [#allocation3], 4294967040 }
 0x113   :  { %178 = vsyncpa [#allocation3], 1 }

// kernel: _locmotionapp_forward_impl.14
= control target key start
LH: loop header
LB: loop body
LE: loop exit
PB: predicated region body
PF: predicated region fallthrough
CT: control target
= control target key end

     0   :  { %v426_v0 = vmov 0.0   ;;  %vm427_vm0 = vmmov 0   ;;  %vm45_vm1 = vcmask 130048   ;;  %vm163_vm2 = vcmask 261120   ;;  %s517_s2 = inlined_call_operand.vmem [shape: bf16[16,32], index: 2, kind: input, shape index: {}, may-alias: {2,3}]   ;;  %s518_s0 = inlined_call_operand.vmem [shape: bf16[16,16], index: 0, kind: input, shape index: {}]   ;;  %s519_s1 = inlined_call_operand.vmem [shape: bf16[16,16], index: 1, kind: input, shape index: {}]   ;;  %s520_s5 = inlined_call_operand.vmem [shape: bf16[32,64], index: 5, kind: input, shape index: {}]   ;;  %s521_s4 = inlined_call_operand.vmem [shape: bf16[32,64], index: 4, kind: input, shape index: {}]   ;;  %s522_s6 = inlined_call_operand.vmem [shape: bf16[32,64], index: 6, kind: input, shape index: {}]   ;;  %s523_s3 = inlined_call_operand.vmem [shape: bf16[16,32], index: 3, kind: input, shape index: {}, may-alias: {2,3}]   ;;  %s524_s7 = inlined_call_operand.vmem [shape: f32[1,64], index: 7, kind: input, shape index: {}]   ;;  %s525_s8 = inlined_call_operand.vmem [shape: f32[16,64], index: 8, kind: output, shape index: {}]  }
   0x1   :  { %378 = vmatprep.subr.bf16.mxu0 %v426_v0  ;;  %384 = vmatprep.subr.bf16.mxu1 %v426_v0  ;;  %v416_v1 = vld [vmem:[%s517_s2] sm:$0xff]   ;;  %v419_v4 = vld [vmem:[%s520_s5 + $0x8] sm:$0xff]   ;;  %vm342_vm3 = vcmask 523264  }
   0x2   :  { %380 = vmatprep.mubr.msk.bf16.mxu0 %vm427_vm0, %v426_v0  ;;  %386 = vmatprep.mubr.msk.bf16.mxu1 %vm427_vm0, %v426_v0  ;;  %v417_v2 = vld [vmem:[%s518_s0] sm:$0xff]   ;;  %v420_v5 = vld [vmem:[%s521_s4 + $0x8] sm:$0xff]  }
   0x3   :  { %379 = vmatpush3.bf16.msra.mxu0 %v416_v1  ;;  %385 = vmatpush3.bf16.msra.mxu1 %v416_v1  ;;  %v418_v3 = vld [vmem:[%s519_s1] sm:$0xff]   ;;  %v423_v14 = vld [vmem:[%s522_s6 + $0x8] sm:$0xff]  }
   0x4   :  { %390 = vmatprep.subr.bf16.mxu0 %v426_v0  ;;  %398 = vmatprep.subr.bf16.mxu1 %v426_v0  ;;  %v421_v6 = vld [vmem:[%s520_s5] sm:$0xff]  }
   0x5   :  { %v422_v7 = vld [vmem:[%s521_s4] sm:$0xff]  }
   0x6   :  { %381 = vmatmul.mubr.msk.bf16.vlgmr.msra.gmra.mxu0 %vm45_vm1, %v417_v2  ;;  %387 = vmatmul.mubr.msk.bf16.vlgmr.msra.gmra.mxu1 %vm45_vm1, %v418_v3  ;;  %v424_v19 = vld [vmem:[%s522_s6] sm:$0xff]  }
   0x7   :  { %391 = vmatpush3.bf16.msra.mxu0 %v419_v4  ;;  %394 = vmatprep.mubr.msk.bf16.mxu0 %vm427_vm0, %v426_v0  ;;  %v425_v20 = vld [vmem:[%s523_s3] sm:$0xff]  }
   0x8   :  { %392 = vmatprep.subr.bf16.mxu0 %v426_v0  ;;  %402 = vmatprep.mubr.msk.bf16.mxu1 %vm427_vm0, %v426_v0  ;;  %v364_v31 = vld [vmem:[%s524_s7] ss:$0 sm:$0xff] }
   0x9   :  { %399 = vmatpush3.bf16.msra.mxu1 %v420_v5 }
   0xa   :  { %400 = vmatprep.subr.bf16.mxu1 %v426_v0 }
   0xb   :  { %393 = vmatpush3.bf16.msra.mxu0 %v421_v6 }
   0xc   :  { %406 = vmatprep.subr.bf16.mxu0 %v426_v0 }
   0xd   :  { %401 = vmatpush3.bf16.msra.mxu1 %v422_v7 }
  0xc6   :  { %v83_v8 = vpop.f32.mrf.mxu0  ;;  %v135_v9 = vpop.f32.mrf.mxu1 }
  0xc8   :  { %v382_v10 = vpop.f32.mrf.mxu0  ;;  %v388_v11 = vpop.f32.mrf.mxu1 }
  0xca   :  { %v86_v12 = vpop.f32.mrf.mxu0  ;;  %v138_v13 = vpop.f32.mrf.mxu1 }
  0xcb   :  { %v90_v15 = vpack.c.bf16 %v86_v12, %v83_v8  ;;  %v142_v16 = vpack.c.bf16 %v138_v13, %v135_v9 }
  0xcc   :  { %v383_v17 = vpop.f32.mrf.mxu0  ;;  %v389_v18 = vpop.f32.mrf.mxu1 }
  0xcd   :  { %395 = vmatmul.mubr.msk.bf16.vlgmr.msra.gmra.mxu0 %vm163_vm2, %v142_v16  ;;  %403 = vmatmul.mubr.msk.bf16.vlgmr.msra.gmra.mxu1 %vm163_vm2, %v90_v15 }
  0xce   :  { %407 = vmatpush3.bf16.msra.mxu0 %v423_v14  ;;  %410 = vmatprep.mubr.msk.bf16.mxu0 %vm427_vm0, %v426_v0 }
  0xcf   :  { %408 = vmatprep.subr.bf16.mxu0 %v426_v0 }
  0xd2   :  { %409 = vmatpush3.bf16.msra.mxu0 %v424_v19 }
  0xd5   :  { %411 = vmatmul.mubr.msk.bf16.vlgmr.msra.gmra.mxu0 %vm163_vm2, %v425_v20 }
 0x18d   :  { %v201_v21 = vpop.f32.mrf.mxu0  ;;  %v257_v22 = vpop.f32.mrf.mxu1 }
 0x18e   :  { %v258_v29 = vadd.f32 %v257_v22, %v201_v21 }
 0x18f   :  { %v396_v23 = vpop.f32.mrf.mxu0  ;;  %v404_v24 = vpop.f32.mrf.mxu1 }
 0x191   :  { %v204_v25 = vpop.f32.mrf.mxu0  ;;  %v260_v26 = vpop.f32.mrf.mxu1 }
 0x192   :  { %v261_v34 = vadd.f32 %v260_v26, %v204_v25 }
 0x193   :  { %v397_v27 = vpop.f32.mrf.mxu0  ;;  %v405_v28 = vpop.f32.mrf.mxu1 }
 0x195   :  { %v324_v30 = vpop.f32.mrf.mxu0 }
 0x196   :  { %v331_v32 = vadd.f32 %v324_v30, %v258_v29 }
 0x197   :  { %v412_v33 = vpop.f32.mrf.mxu0 }
 0x198   :  { %v340_v35 = vadd.f32 %v364_v31, %v331_v32 }
 0x199   :  { %v327_v36 = vpop.f32.mrf.mxu0 }
 0x19a   :  { %343 = vst.msk [vmem:[%s525_s8] sm:$0xff] %vm342_vm3, %v340_v35  ;;  %v332_v37 = vadd.f32 %v327_v36, %v261_v34 }
 0x19b   :  { %v413_v38 = vpop.f32.mrf.mxu0 }
 0x19c   :  { %v341_v39 = vadd.f32 %v364_v31, %v332_v37 }
 0x19e   :  { %344 = vst.msk [vmem:[%s525_s8 + $0x8] sm:$0xff] %vm342_vm3, %v341_v39 }

</bundles_post_ra>
